<compile_context>
chip_gen: v5e
topology: v5e:2x2
jax: 0.10.0
libtpu: 0.0.40
codegen_flags: <defaults>
</compile_context>

<pallas_src>
import functools

import jax
import jax.numpy as jnp
from jax import lax
from jax.experimental import pallas as pl
from jax.experimental.pallas import tpu as pltpu


def _round_up(x, m):
    return ((x + m - 1) // m) * m


def _convblock_kernel(x_ref, w_ref, sa_ref, o_ref, *, k, s, tile_h, wo_p, linear):
    # x_ref : (1, Hp, Wp, Cin)          zero-padded NHWC activation (bf16), one batch
    #                                   element, resident across the output-row axis.
    # w_ref : (k*k, Cin, Cout_p)        conv weight with BN scale folded in (bf16).
    # sa_ref: (2, Cout_p)               row 0 = BN shift, row 1 = PReLU alpha (f32).
    # o_ref : (1, tile_h*Wo_p, Cout_p)  output rows (NHWC raster within the tile), f32.
    cin = x_ref.shape[-1]
    cout_p = o_ref.shape[-1]
    h = pl.program_id(1)
    row0 = h * (tile_h * s)                    # first input row of this output-row tile

    acc = jnp.zeros((tile_h * wo_p, cout_p), jnp.float32)
    for di in range(k):
        for dj in range(k):
            if s == 1:
                patch = x_ref[0, pl.ds(row0 + di, tile_h), dj:dj + wo_p, :]
            else:
                patch = x_ref[0, pl.ds(row0 + di, tile_h, stride=s),
                              pl.ds(dj, wo_p, stride=s), :]
            lhs = patch.reshape(tile_h * wo_p, cin)          # (rows, Cin), bf16
            acc = acc + jnp.dot(lhs, w_ref[di * k + dj],
                                preferred_element_type=jnp.float32)

    y = acc + sa_ref[0:1, :]                                 # BN shift (scale in w)
    if not linear:
        alpha = sa_ref[1:2, :]
        y = jnp.where(y > 0, y, alpha * y)                   # PReLU
    o_ref[0, :, :] = y.astype(o_ref.dtype)


def conv_block_forward(x_nchw, params, *, k, s, p, linear=False, tile_h=8):
    """ConvBlock forward. x_nchw: (N, Cin, H, W) float32. Returns (N, Cout, Ho, Wo) f32."""
    weight = params["weight"]
    gamma, beta = params["gamma"], params["beta"]
    running_mean, running_var = params["running_mean"], params["running_var"]
    eps = 1e-5

    cout, cin, kk, _ = weight.shape
    assert kk == k
    N, C, H, W = x_nchw.shape
    assert C == cin

    Ho = (H + 2 * p - k) // s + 1
    Wo = (W + 2 * p - k) // s + 1

    LANE, SUBLANE = 128, 8
    cout_p = _round_up(cout, LANE)          # lane-dense outputs / weights
    wo_p = _round_up(Wo, SUBLANE)           # layout-friendly row-tile width
    ho_p = _round_up(Ho, tile_h)
    n_h = ho_p // tile_h

    # Zero-padded NHWC activation covering conv padding + tiling padding (bf16).
    hp_pad = max((ho_p - 1) * s + k, H + 2 * p)
    wp_pad = max((wo_p - 1) * s + k, W + 2 * p)
    x_nhwc = jnp.transpose(x_nchw, (0, 2, 3, 1)).astype(jnp.bfloat16)
    x_pad = jnp.pad(x_nhwc, ((0, 0), (p, hp_pad - H - p), (p, wp_pad - W - p), (0, 0)))

    # Fold BN (inference running stats) into per-channel scale/shift; fold the
    # scale into the conv weight so the kernel epilogue is shift + PReLU only.
    scale = gamma / jnp.sqrt(running_var + eps)              # (cout,)
    shift = beta - running_mean * scale                      # (cout,)
    if linear or "alpha" not in params:
        alpha = jnp.zeros((cout,), jnp.float32)
    else:
        alpha = params["alpha"]

    # (Cout, Cin, k, k) -> (k*k, Cin, Cout_p), BN-scaled, channel-padded, bf16.
    w3 = jnp.transpose(weight, (2, 3, 1, 0)).reshape(k * k, cin, cout)
    w3 = w3 * scale[None, None, :]
    w3 = jnp.pad(w3, ((0, 0), (0, 0), (0, cout_p - cout))).astype(jnp.bfloat16)

    sa = jnp.stack([jnp.pad(shift.astype(jnp.float32), (0, cout_p - cout)),
                    jnp.pad(alpha.astype(jnp.float32), (0, cout_p - cout))], axis=0)

    kernel = functools.partial(_convblock_kernel, k=k, s=s, tile_h=tile_h,
                               wo_p=wo_p, linear=linear)
    out = pl.pallas_call(
        kernel,
        out_shape=jax.ShapeDtypeStruct((N, ho_p * wo_p, cout_p), jnp.float32),
        grid_spec=pltpu.PrefetchScalarGridSpec(
            num_scalar_prefetch=0,
            grid=(N, n_h),
            in_specs=[
                # whole padded image of batch n; constant across the h axis (no re-DMA)
                pl.BlockSpec((1, hp_pad, wp_pad, cin), lambda n, h: (n, 0, 0, 0)),
                pl.BlockSpec((k * k, cin, cout_p), lambda n, h: (0, 0, 0)),
                pl.BlockSpec((2, cout_p), lambda n, h: (0, 0)),
            ],
            out_specs=pl.BlockSpec((1, tile_h * wo_p, cout_p), lambda n, h: (n, h, 0)),
        ),
        compiler_params=pltpu.CompilerParams(
            dimension_semantics=("parallel", "parallel")),
    )(x_pad, w3, sa)

    out = out.reshape(N, ho_p, wo_p, cout_p)[:, :Ho, :Wo, :cout]
    return jnp.transpose(out, (0, 3, 1, 2))                  # back to NCHW


def _reference(x_nchw, params, *, k, s, p, linear=False):
    """Pure-JAX reference mirroring PyTorch semantics (BN in inference mode)."""
    w = params["weight"]
    eps = 1e-5
    y = lax.conv_general_dilated(
        x_nchw, w, window_strides=(s, s), padding=[(p, p), (p, p)],
        dimension_numbers=("NCHW", "OIHW", "NCHW"))
    scale = (params["gamma"] / jnp.sqrt(params["running_var"] + eps))
    shift = params["beta"] - params["running_mean"] * scale
    y = y * scale[None, :, None, None] + shift[None, :, None, None]
    if not linear:
        a = params["alpha"][None, :, None, None]
        y = jnp.where(y > 0, y, a * y)
    return y


if __name__ == "__main__":
    # ConvBlock(inp=4, oup=8, k=3, s=1, p=1, dw=False, linear=False)
    inp, oup, k, s, p = 4, 8, 3, 1, 1
    N, H, W = 2, 16, 16

    key = jax.random.PRNGKey(0)
    kx, kw, kg, kb, km, kv, ka = jax.random.split(key, 7)

    x = jax.random.normal(kx, (N, inp, H, W), dtype=jnp.float32)
    params = {
        "weight": jax.random.normal(kw, (oup, inp, k, k), dtype=jnp.float32) * 0.1,
        "gamma": 1.0 + 0.1 * jax.random.normal(kg, (oup,), dtype=jnp.float32),
        "beta": 0.1 * jax.random.normal(kb, (oup,), dtype=jnp.float32),
        "running_mean": 0.1 * jax.random.normal(km, (oup,), dtype=jnp.float32),
        "running_var": jnp.abs(jax.random.normal(kv, (oup,), dtype=jnp.float32)) + 0.5,
        "alpha": jnp.full((oup,), 0.25, dtype=jnp.float32),  # PReLU default init
    }

    out = conv_block_forward(x, params, k=k, s=s, p=p, linear=False)
    out = jax.block_until_ready(out)

    ref = _reference(x, params, k=k, s=s, p=p, linear=False)
    assert out.shape == (N, oup, H, W), out.shape
    # bf16 inputs / f32 accumulation -> loosened tolerance vs the f32 reference.
    assert jnp.allclose(out, ref, atol=5e-2, rtol=5e-2), "mismatch vs reference"

    print("KERNEL_OK")
</pallas_src>

<mosaic_0001>
module attributes {stable_mosaic.version = 11 : i64} {
  func.func @_convblock_kernel(%arg0: i32, %arg1: i32, %arg2: memref<1x18x18x4xbf16, #tpu.memory_space<vmem>>, %arg3: memref<9x4x128xbf16, #tpu.memory_space<vmem>>, %arg4: memref<2x128xf32, #tpu.memory_space<vmem>>, %arg5: memref<1x128x128xf32, #tpu.memory_space<vmem>>) attributes {dimension_semantics = [#tpu.dimension_semantics<parallel>, #tpu.dimension_semantics<parallel>], iteration_bounds = array<i64: 2, 2>, scalar_prefetch = 0 : i64, scratch_operands = 0 : i64, tpu.core_type = #tpu.core_type<tc>, window_params = [{transform_indices = @transform_0, window_bounds = array<i64: 1, 18, 18, 4>}, {pipeline_mode = #tpu.pipeline_mode<synchronous>, transform_indices = @transform_1, window_bounds = array<i64: 9, 4, 128>}, {pipeline_mode = #tpu.pipeline_mode<synchronous>, transform_indices = @transform_2, window_bounds = array<i64: 2, 128>}, {transform_indices = @transform_3, window_bounds = array<i64: 1, 128, 128>}]} {
    %c8_i32 = arith.constant 8 : i32
    %0 = arith.muli %arg1, %c8_i32 : i32
    %cst = arith.constant 0.000000e+00 : f32
    %1 = vector.broadcast %cst : f32 to vector<128x128xf32>
    %c0_i32 = arith.constant 0 : i32
    %2 = arith.addi %0, %c0_i32 : i32
    %c0 = arith.constant 0 : index
    %3 = arith.index_cast %2 : i32 to index
    %c0_0 = arith.constant 0 : index
    %c0_1 = arith.constant 0 : index
    %4 = vector.load %arg2[%c0, %3, %c0_0, %c0_1] : memref<1x18x18x4xbf16, #tpu.memory_space<vmem>>, vector<1x8x16x4xbf16>
    %5 = vector.shape_cast %4 : vector<1x8x16x4xbf16> to vector<8x16x4xbf16>
    %6 = vector.shape_cast %5 : vector<8x16x4xbf16> to vector<128x4xbf16>
    %c0_2 = arith.constant 0 : index
    %c0_3 = arith.constant 0 : index
    %c0_4 = arith.constant 0 : index
    %7 = vector.load %arg3[%c0_2, %c0_3, %c0_4] : memref<9x4x128xbf16, #tpu.memory_space<vmem>>, vector<1x4x128xbf16>
    %8 = vector.shape_cast %7 : vector<1x4x128xbf16> to vector<4x128xbf16>
    %cst_5 = arith.constant dense<0.000000e+00> : vector<128x128xf32>
    %9 = tpu.matmul %6, %8, %cst_5 {dimension_numbers = #tpu.dot_dimension_numbers<[1], [0], [0], [1], [0, 0, 1, 1], [], []>} : vector<128x4xbf16>, vector<4x128xbf16>, vector<128x128xf32> -> vector<128x128xf32>
    %10 = arith.addf %1, %9 : vector<128x128xf32>
    %c0_i32_6 = arith.constant 0 : i32
    %11 = arith.addi %0, %c0_i32_6 : i32
    %c0_7 = arith.constant 0 : index
    %12 = arith.index_cast %11 : i32 to index
    %c1 = arith.constant 1 : index
    %c0_8 = arith.constant 0 : index
    %13 = vector.load %arg2[%c0_7, %12, %c1, %c0_8] : memref<1x18x18x4xbf16, #tpu.memory_space<vmem>>, vector<1x8x16x4xbf16>
    %14 = vector.shape_cast %13 : vector<1x8x16x4xbf16> to vector<8x16x4xbf16>
    %15 = vector.shape_cast %14 : vector<8x16x4xbf16> to vector<128x4xbf16>
    %c1_9 = arith.constant 1 : index
    %c0_10 = arith.constant 0 : index
    %c0_11 = arith.constant 0 : index
    %16 = vector.load %arg3[%c1_9, %c0_10, %c0_11] : memref<9x4x128xbf16, #tpu.memory_space<vmem>>, vector<1x4x128xbf16>
    %17 = vector.shape_cast %16 : vector<1x4x128xbf16> to vector<4x128xbf16>
    %cst_12 = arith.constant dense<0.000000e+00> : vector<128x128xf32>
    %18 = tpu.matmul %15, %17, %cst_12 {dimension_numbers = #tpu.dot_dimension_numbers<[1], [0], [0], [1], [0, 0, 1, 1], [], []>} : vector<128x4xbf16>, vector<4x128xbf16>, vector<128x128xf32> -> vector<128x128xf32>
    %19 = arith.addf %10, %18 : vector<128x128xf32>
    %c0_i32_13 = arith.constant 0 : i32
    %20 = arith.addi %0, %c0_i32_13 : i32
    %c0_14 = arith.constant 0 : index
    %21 = arith.index_cast %20 : i32 to index
    %c2 = arith.constant 2 : index
    %c0_15 = arith.constant 0 : index
    %22 = vector.load %arg2[%c0_14, %21, %c2, %c0_15] : memref<1x18x18x4xbf16, #tpu.memory_space<vmem>>, vector<1x8x16x4xbf16>
    %23 = vector.shape_cast %22 : vector<1x8x16x4xbf16> to vector<8x16x4xbf16>
    %24 = vector.shape_cast %23 : vector<8x16x4xbf16> to vector<128x4xbf16>
    %c2_16 = arith.constant 2 : index
    %c0_17 = arith.constant 0 : index
    %c0_18 = arith.constant 0 : index
    %25 = vector.load %arg3[%c2_16, %c0_17, %c0_18] : memref<9x4x128xbf16, #tpu.memory_space<vmem>>, vector<1x4x128xbf16>
    %26 = vector.shape_cast %25 : vector<1x4x128xbf16> to vector<4x128xbf16>
    %cst_19 = arith.constant dense<0.000000e+00> : vector<128x128xf32>
    %27 = tpu.matmul %24, %26, %cst_19 {dimension_numbers = #tpu.dot_dimension_numbers<[1], [0], [0], [1], [0, 0, 1, 1], [], []>} : vector<128x4xbf16>, vector<4x128xbf16>, vector<128x128xf32> -> vector<128x128xf32>
    %28 = arith.addf %19, %27 : vector<128x128xf32>
    %c1_i32 = arith.constant 1 : i32
    %29 = arith.addi %0, %c1_i32 : i32
    %c0_20 = arith.constant 0 : index
    %30 = arith.index_cast %29 : i32 to index
    %c0_21 = arith.constant 0 : index
    %c0_22 = arith.constant 0 : index
    %31 = vector.load %arg2[%c0_20, %30, %c0_21, %c0_22] : memref<1x18x18x4xbf16, #tpu.memory_space<vmem>>, vector<1x8x16x4xbf16>
    %32 = vector.shape_cast %31 : vector<1x8x16x4xbf16> to vector<8x16x4xbf16>
    %33 = vector.shape_cast %32 : vector<8x16x4xbf16> to vector<128x4xbf16>
    %c3 = arith.constant 3 : index
    %c0_23 = arith.constant 0 : index
    %c0_24 = arith.constant 0 : index
    %34 = vector.load %arg3[%c3, %c0_23, %c0_24] : memref<9x4x128xbf16, #tpu.memory_space<vmem>>, vector<1x4x128xbf16>
    %35 = vector.shape_cast %34 : vector<1x4x128xbf16> to vector<4x128xbf16>
    %cst_25 = arith.constant dense<0.000000e+00> : vector<128x128xf32>
    %36 = tpu.matmul %33, %35, %cst_25 {dimension_numbers = #tpu.dot_dimension_numbers<[1], [0], [0], [1], [0, 0, 1, 1], [], []>} : vector<128x4xbf16>, vector<4x128xbf16>, vector<128x128xf32> -> vector<128x128xf32>
    %37 = arith.addf %28, %36 : vector<128x128xf32>
    %c1_i32_26 = arith.constant 1 : i32
    %38 = arith.addi %0, %c1_i32_26 : i32
    %c0_27 = arith.constant 0 : index
    %39 = arith.index_cast %38 : i32 to index
    %c1_28 = arith.constant 1 : index
    %c0_29 = arith.constant 0 : index
    %40 = vector.load %arg2[%c0_27, %39, %c1_28, %c0_29] : memref<1x18x18x4xbf16, #tpu.memory_space<vmem>>, vector<1x8x16x4xbf16>
    %41 = vector.shape_cast %40 : vector<1x8x16x4xbf16> to vector<8x16x4xbf16>
    %42 = vector.shape_cast %41 : vector<8x16x4xbf16> to vector<128x4xbf16>
    %c4 = arith.constant 4 : index
    %c0_30 = arith.constant 0 : index
    %c0_31 = arith.constant 0 : index
    %43 = vector.load %arg3[%c4, %c0_30, %c0_31] : memref<9x4x128xbf16, #tpu.memory_space<vmem>>, vector<1x4x128xbf16>
    %44 = vector.shape_cast %43 : vector<1x4x128xbf16> to vector<4x128xbf16>
    %cst_32 = arith.constant dense<0.000000e+00> : vector<128x128xf32>
    %45 = tpu.matmul %42, %44, %cst_32 {dimension_numbers = #tpu.dot_dimension_numbers<[1], [0], [0], [1], [0, 0, 1, 1], [], []>} : vector<128x4xbf16>, vector<4x128xbf16>, vector<128x128xf32> -> vector<128x128xf32>
    %46 = arith.addf %37, %45 : vector<128x128xf32>
    %c1_i32_33 = arith.constant 1 : i32
    %47 = arith.addi %0, %c1_i32_33 : i32
    %c0_34 = arith.constant 0 : index
    %48 = arith.index_cast %47 : i32 to index
    %c2_35 = arith.constant 2 : index
    %c0_36 = arith.constant 0 : index
    %49 = vector.load %arg2[%c0_34, %48, %c2_35, %c0_36] : memref<1x18x18x4xbf16, #tpu.memory_space<vmem>>, vector<1x8x16x4xbf16>
    %50 = vector.shape_cast %49 : vector<1x8x16x4xbf16> to vector<8x16x4xbf16>
    %51 = vector.shape_cast %50 : vector<8x16x4xbf16> to vector<128x4xbf16>
    %c5 = arith.constant 5 : index
    %c0_37 = arith.constant 0 : index
    %c0_38 = arith.constant 0 : index
    %52 = vector.load %arg3[%c5, %c0_37, %c0_38] : memref<9x4x128xbf16, #tpu.memory_space<vmem>>, vector<1x4x128xbf16>
    %53 = vector.shape_cast %52 : vector<1x4x128xbf16> to vector<4x128xbf16>
    %cst_39 = arith.constant dense<0.000000e+00> : vector<128x128xf32>
    %54 = tpu.matmul %51, %53, %cst_39 {dimension_numbers = #tpu.dot_dimension_numbers<[1], [0], [0], [1], [0, 0, 1, 1], [], []>} : vector<128x4xbf16>, vector<4x128xbf16>, vector<128x128xf32> -> vector<128x128xf32>
    %55 = arith.addf %46, %54 : vector<128x128xf32>
    %c2_i32 = arith.constant 2 : i32
    %56 = arith.addi %0, %c2_i32 : i32
    %c0_40 = arith.constant 0 : index
    %57 = arith.index_cast %56 : i32 to index
    %c0_41 = arith.constant 0 : index
    %c0_42 = arith.constant 0 : index
    %58 = vector.load %arg2[%c0_40, %57, %c0_41, %c0_42] : memref<1x18x18x4xbf16, #tpu.memory_space<vmem>>, vector<1x8x16x4xbf16>
    %59 = vector.shape_cast %58 : vector<1x8x16x4xbf16> to vector<8x16x4xbf16>
    %60 = vector.shape_cast %59 : vector<8x16x4xbf16> to vector<128x4xbf16>
    %c6 = arith.constant 6 : index
    %c0_43 = arith.constant 0 : index
    %c0_44 = arith.constant 0 : index
    %61 = vector.load %arg3[%c6, %c0_43, %c0_44] : memref<9x4x128xbf16, #tpu.memory_space<vmem>>, vector<1x4x128xbf16>
    %62 = vector.shape_cast %61 : vector<1x4x128xbf16> to vector<4x128xbf16>
    %cst_45 = arith.constant dense<0.000000e+00> : vector<128x128xf32>
    %63 = tpu.matmul %60, %62, %cst_45 {dimension_numbers = #tpu.dot_dimension_numbers<[1], [0], [0], [1], [0, 0, 1, 1], [], []>} : vector<128x4xbf16>, vector<4x128xbf16>, vector<128x128xf32> -> vector<128x128xf32>
    %64 = arith.addf %55, %63 : vector<128x128xf32>
    %c2_i32_46 = arith.constant 2 : i32
    %65 = arith.addi %0, %c2_i32_46 : i32
    %c0_47 = arith.constant 0 : index
    %66 = arith.index_cast %65 : i32 to index
    %c1_48 = arith.constant 1 : index
    %c0_49 = arith.constant 0 : index
    %67 = vector.load %arg2[%c0_47, %66, %c1_48, %c0_49] : memref<1x18x18x4xbf16, #tpu.memory_space<vmem>>, vector<1x8x16x4xbf16>
    %68 = vector.shape_cast %67 : vector<1x8x16x4xbf16> to vector<8x16x4xbf16>
    %69 = vector.shape_cast %68 : vector<8x16x4xbf16> to vector<128x4xbf16>
    %c7 = arith.constant 7 : index
    %c0_50 = arith.constant 0 : index
    %c0_51 = arith.constant 0 : index
    %70 = vector.load %arg3[%c7, %c0_50, %c0_51] : memref<9x4x128xbf16, #tpu.memory_space<vmem>>, vector<1x4x128xbf16>
    %71 = vector.shape_cast %70 : vector<1x4x128xbf16> to vector<4x128xbf16>
    %cst_52 = arith.constant dense<0.000000e+00> : vector<128x128xf32>
    %72 = tpu.matmul %69, %71, %cst_52 {dimension_numbers = #tpu.dot_dimension_numbers<[1], [0], [0], [1], [0, 0, 1, 1], [], []>} : vector<128x4xbf16>, vector<4x128xbf16>, vector<128x128xf32> -> vector<128x128xf32>
    %73 = arith.addf %64, %72 : vector<128x128xf32>
    %c2_i32_53 = arith.constant 2 : i32
    %74 = arith.addi %0, %c2_i32_53 : i32
    %c0_54 = arith.constant 0 : index
    %75 = arith.index_cast %74 : i32 to index
    %c2_55 = arith.constant 2 : index
    %c0_56 = arith.constant 0 : index
    %76 = vector.load %arg2[%c0_54, %75, %c2_55, %c0_56] : memref<1x18x18x4xbf16, #tpu.memory_space<vmem>>, vector<1x8x16x4xbf16>
    %77 = vector.shape_cast %76 : vector<1x8x16x4xbf16> to vector<8x16x4xbf16>
    %78 = vector.shape_cast %77 : vector<8x16x4xbf16> to vector<128x4xbf16>
    %c8 = arith.constant 8 : index
    %c0_57 = arith.constant 0 : index
    %c0_58 = arith.constant 0 : index
    %79 = vector.load %arg3[%c8, %c0_57, %c0_58] : memref<9x4x128xbf16, #tpu.memory_space<vmem>>, vector<1x4x128xbf16>
    %80 = vector.shape_cast %79 : vector<1x4x128xbf16> to vector<4x128xbf16>
    %cst_59 = arith.constant dense<0.000000e+00> : vector<128x128xf32>
    %81 = tpu.matmul %78, %80, %cst_59 {dimension_numbers = #tpu.dot_dimension_numbers<[1], [0], [0], [1], [0, 0, 1, 1], [], []>} : vector<128x4xbf16>, vector<4x128xbf16>, vector<128x128xf32> -> vector<128x128xf32>
    %82 = arith.addf %73, %81 : vector<128x128xf32>
    %c0_60 = arith.constant 0 : index
    %c0_61 = arith.constant 0 : index
    %83 = vector.load %arg4[%c0_60, %c0_61] : memref<2x128xf32, #tpu.memory_space<vmem>>, vector<1x128xf32>
    %84 = vector.broadcast %83 : vector<1x128xf32> to vector<128x128xf32>
    %85 = arith.addf %82, %84 : vector<128x128xf32>
    %c1_62 = arith.constant 1 : index
    %c0_63 = arith.constant 0 : index
    %86 = vector.load %arg4[%c1_62, %c0_63] : memref<2x128xf32, #tpu.memory_space<vmem>>, vector<1x128xf32>
    %cst_64 = arith.constant 0.000000e+00 : f32
    %87 = vector.broadcast %cst_64 : f32 to vector<128x128xf32>
    %88 = arith.cmpf ogt, %85, %87 : vector<128x128xf32>
    %89 = vector.broadcast %86 : vector<1x128xf32> to vector<128x128xf32>
    %90 = arith.mulf %89, %85 : vector<128x128xf32>
    %91 = arith.select %88, %85, %90 : vector<128x128xi1>, vector<128x128xf32>
    %c0_65 = arith.constant 0 : index
    %c0_66 = arith.constant 0 : index
    %c0_67 = arith.constant 0 : index
    %92 = vector.load %arg5[%c0_65, %c0_66, %c0_67] : memref<1x128x128xf32, #tpu.memory_space<vmem>>, vector<1x128x128xf32>
    %93 = vector.shape_cast %92 : vector<1x128x128xf32> to vector<128x128xf32>
    %94 = vector.shape_cast %91 : vector<128x128xf32> to vector<1x128x128xf32>
    tpu.vector_store %arg5[%c0_65, %c0_66, %c0_67], %94 {strides = array<i32>} : memref<1x128x128xf32, #tpu.memory_space<vmem>>, vector<1x128x128xf32>,
    return
  }
  func.func @transform_0(%arg0: i32, %arg1: i32) -> (i32, i32, i32, i32) {
    %c0_i32 = arith.constant 0 : i32
    %c0_i32_0 = arith.constant 0 : i32
    %c0_i32_1 = arith.constant 0 : i32
    %c0_i32_2 = arith.constant 0 : i32
    return %arg0, %c0_i32, %c0_i32_0, %c0_i32_1 : i32, i32, i32, i32
  }
  func.func @transform_1(%arg0: i32, %arg1: i32) -> (i32, i32, i32) {
    %c0_i32 = arith.constant 0 : i32
    %c0_i32_0 = arith.constant 0 : i32
    %c0_i32_1 = arith.constant 0 : i32
    %c0_i32_2 = arith.constant 0 : i32
    return %c0_i32, %c0_i32_0, %c0_i32_1 : i32, i32, i32
  }
  func.func @transform_2(%arg0: i32, %arg1: i32) -> (i32, i32) {
    %c0_i32 = arith.constant 0 : i32
    %c0_i32_0 = arith.constant 0 : i32
    %c0_i32_1 = arith.constant 0 : i32
    return %c0_i32, %c0_i32_0 : i32, i32
  }
  func.func @transform_3(%arg0: i32, %arg1: i32) -> (i32, i32, i32) {
    %c0_i32 = arith.constant 0 : i32
    %c0_i32_0 = arith.constant 0 : i32
    return %arg0, %arg1, %c0_i32 : i32, i32, i32
  }
}

</mosaic_0001>

<bundles_post_ra>
// kernel: tpu_custom_call.1
= control target key start
LH: loop header
LB: loop body
LE: loop exit
PB: predicated region body
PF: predicated region fallthrough
CT: control target
= control target key end

     0   :  { %8 = vsyncpa [#allocation3], 0  ;;  %s3865_s0 = inlined_call_operand.vmem [shape: bf16[2,18,18,4], index: 0, kind: input, shape index: {}]   ;;  %s3866_s1 = inlined_call_operand.vmem [shape: bf16[9,4,128], index: 1, kind: input, shape index: {}]   ;;  %s3867_s2 = inlined_call_operand.vmem [shape: f32[2,128], index: 2, kind: input, shape index: {}]   ;;  %s3868_s3 = inlined_call_operand.hbm [shape: f32[2,256,128], index: 3, kind: output, shape index: {}]  }
   0x1   :  { %10 = vsyncpa [#allocation3 + $0x1], 0  ;;  %s2944_s12 = smov 0   ;;  %s2946_s13 = smov 0  }
   0x2   :  { %s2948_s14 = smov 0   ;;  %s2950_s15 = smov 0  }
   0x3   :  { %s2952_s16 = smov 0   ;;  %s2954_s17 = smov 0  }
   0x4   :  { %s2956_s18 = smov 0   ;;  %s2958_s19 = smov 0  }
   0x5 LB: > { %s2406_s20 = sadd.s32 4294967295, %s2920_s19   ;;  %s2407_s21 = sadd.s32 4294967294, %s2920_s19   ;;  %s2920_s19 = sphi %s2958_s19, %s16_s19   ;;  %s2916_s18 = sphi %s2956_s18, %s3881_s18   ;;  %s2912_s17 = sphi %s2954_s17, %s3880_s17   ;;  %s2908_s16 = sphi %s2952_s16, %s3879_s16   ;;  %s2904_s15 = sphi %s2950_s15, %s3878_s15   ;;  %s2900_s14 = sphi %s2948_s14, %s3877_s14   ;;  %s2896_s13 = sphi %s2946_s13, %s3876_s13   ;;  %s2892_s12 = sphi %s2944_s12, %s3875_s12  }
   0x6   : > { %s25_s22 = sadd.s32 1, %s2912_s17  ;;  %s28_s23 = sadd.s32 1, %s2916_s18 }
   0x7   : > { %p26_p0 = scmp.ge.s32.totalorder %s25_s22, 2  ;;  %p115_p1 = scmp.ne.s32.totalorder %s2900_s14, %s2896_s13 }
   0x8   : > { %p116_p2 = scmp.eq.s32.totalorder %s2406_s20, 3  ;;  %p121_p5 = scmp.ne.s32.totalorder %s2896_s13, %s2892_s12 }
   0x9   : > { %s3883_s22 = smov (%p26_p0, %s25_s22), 0  ;;  %s3885_s23 = smov (!%p26_p0, %s28_s23), %s2916_s18 }
   0xa   : > { %s101_s24 = ssub.s32 %s2912_s17, %s3883_s22  ;;  %p2995_p3 = por %p116_p2, %p115_p1 }
   0xb   : > { %p30_p4 = scmp.ge.s32.totalorder %s3885_s23, 2  ;;  %p122_p6 = scmp.eq.s32.totalorder %s2407_s21, 3 }
   0xc   : > { %p2410_p7 = scmp.ge.s32.totalorder %s2920_s19, 1  ;;  %p154_p9 = scmp.lt.s32.totalorder %s2920_s19, 5 }
   0xd   : > { %s3887_s23 = smov (%p30_p4, %s3885_s23), 0  ;;  %p3004_p8 = por %p122_p6, %p121_p5 }
   0xe   : > { %s100_s27 = ssub.s32 %s2916_s18, %s3887_s23  ;;  %s105_s28 = sadd.s32 1, %s2900_s14 }
   0xf   : > { %s102_s29 = sor.u32 %s101_s24, %s100_s27  ;;  %p155_p10 = pnand %p2410_p7, %p154_p9 }
  0x10   : > { %p103_p11 = scmp.eq.s32.totalorder %s102_s29, 0  ;;  %p178_p12 = scmp.lt.s32.totalorder (!%p155_p10), %s2908_s16, 1 }
  0x11   : > { %158 = sbr.rel (%p155_p10) target bundleno = 479 (0x1df), region = 32  ;;  %s175_s27 = sand.u32 (!%p155_p10), 1, %s2896_s13  }
  0x12   : > { %s3013_s30 = scalar_select %p103_p11, %s2900_s14, %s105_s28  }
  0x13   : > { %s2722_s9 = smul.u32 (!%p155_p10), 96, %s2904_s15  ;;  %s2717_s8 = sshll.u32 (!%p155_p10), %s2904_s15, 4 }
  0x14   : > { %s2303_s28 = scalar_lea.sflag (!%p155_p10), [#allocation3], %s175_s27 }
  0x16   : > { %v2416_v0 = vld [vmem:[%s3866_s1 + $0x2] sm:$0x3]  ;;  %vm460_vm0 = vcmask 1041408   ;;  %s179_s6 = scalar_select %p178_p12, %s2908_s16, 1  ;;  %v2473_v2 = vld [vmem:[%s3866_s1 + $0x4] sm:$0x3] }
  0x17   : > { %v462_v1 = vsel %vm460_vm0, %v2416_v0, 0  ;;  %v763_v3 = vsel %vm460_vm0, %v2473_v2, 0  ;;  %v2500_v4 = vld [vmem:[%s3866_s1 + $0x6] sm:$0x3]  ;;  %v205_v5 = vld [vmem:[%s3866_s1] sm:$0x3] }
  0x18   : > { %2747 = vmatpush.bf16.msra.mxu1 %v462_v1  ;;  %2748 = vmatpush.bf16.msra.mxu2 %v462_v1  ;;  %s2750_s10 = smul.u32 216, %s179_s6  ;;  %v917_v6 = vsel %vm460_vm0, %v2500_v4, 0  ;;  %v578_v7 = vsel %vm460_vm0, %v205_v5, 0  ;;  %v2565_v8 = vld [vmem:[%s3866_s1 + $0x8] sm:$0x3]  ;;  %vm435_vm3 = vcmask 31744  }
  0x19   : > { %2749 = vmatpush.bf16.msra.mxu3 %v462_v1  ;;  %471 = vmatpush.bf16.msra.mxu0 %v462_v1  ;;  %v1251_v9 = vsel %vm460_vm0, %v2565_v8, 0  ;;  %vm214_vm1 = vsmask.f32 3328  ;;  %vm215_vm2 = vsmask.f32 7440  ;;  %vm653_vm5 = vcmask 1042432  }
  0x1a   : > { %s182_s5 = scalar_lea.vmem %s3865_s0, %s2750_s10  ;;  %vm3069_vm4 = vmor %vm214_vm1, %vm215_vm2  ;;  %vm654_vm6 = vcmask 1046532  }
  0x1b   : > { %s3041_s6 = scalar_lea.vmem %s182_s5, %s2722_s9  ;;  %vm3177_vm7 = vmor %vm653_vm5, %vm654_vm6  ;;  %s2718_s9 = sshll.u32 %s2908_s16, 5 }
  0x1c   : > { %772 = vmatpush.bf16.msrb.mxu2 %v763_v3  ;;  %587 = vmatpush.bf16.msrb.mxu1 %v578_v7  ;;  %v193_v10 = vld [vmem:[%s3041_s6 + $0x18] sm:$0xf]  ;;  %v3045_v11 = vld [vmem:[%s3041_s6 + $0x1c] sm:$0xf]  ;;  %v3048_v12 = vld [vmem:[%s3041_s6 + $0x20] sm:$0x1]  ;;  %s2314_s10 = sadd.s32 %s2718_s9, %s2717_s8 }
  0x1d   : > { %926 = vmatpush.bf16.msrb.mxu3 %v917_v6  ;;  %1260 = vmatpush.bf16.msrb.mxu0 %v1251_v9  ;;  %v266_v13 = vshrl.u32 %v193_v10, 16  ;;  %v269_v14 = vshll.u32 %v193_v10, 16  ;;  %v275_v15 = vshll.u32 %v3045_v11, 16  ;;  %v279_v16 = vshrl.u32 %v3045_v11, 16  ;;  %v197_v17 = vld [vmem:[%s3041_s6 + $0x30] sm:$0xf] }
  0x1e   : > { %v285_v18 = vshll.u32 %v3048_v12, 16  ;;  %v3055_v19 = vld [vmem:[%s3041_s6 + $0x34] sm:$0xf]  ;;  %v3058_v20 = vld [vmem:[%s3041_s6 + $0x38] sm:$0x1]  ;;  %v314_v21 = vshrl.u32 %v197_v17, 16 }
  0x1f   : > { %v268_v22 = vrot.slane %v266_v13, 4  ;;  %v271_v23 = vrot.slane %v269_v14, 5  ;;  %v277_v24 = vrot.slane %v275_v15, 5  ;;  %v281_v25 = vrot.slane %v279_v16, 4  ;;  %v201_v26 = vld [vmem:[%s3041_s6 + $0x48] sm:$0xf] }
  0x20   : > { %v287_v27 = vrot.slane %v285_v18, 5  ;;  %v316_v28 = vrot.slane %v314_v21, 4  ;;  %v317_v29 = vshll.u32 %v197_v17, 16  ;;  %v323_v30 = vshll.u32 %v3055_v19, 16  ;;  %v3065_v35 = vld [vmem:[%s3041_s6 + $0x4c] sm:$0xf] }
  0x21   : > { %v272_v31 = vor.u32 %v271_v23, %v268_v22  ;;  %v282_v32 = vor.u32 %v281_v25, %v277_v24  ;;  %v327_v33 = vshrl.u32 %v3055_v19, 16  ;;  %v333_v34 = vshll.u32 %v3058_v20, 16  ;;  %v3074_v46 = vld [vmem:[%s3041_s6 + $0x50] sm:$0x1]  ;;  %v189_v54 = vld [vmem:[%s3041_s6] sm:$0xf] }
  0x22   : > { %v319_v37 = vrot.slane %v317_v29, 5  ;;  %v325_v38 = vrot.slane %v323_v30, 5  ;;  %v362_v39 = vshrl.u32 %v201_v26, 16  ;;  %v365_v40 = vshll.u32 %v201_v26, 16  ;;  %v3087_v2 = vld [vmem:[%s3041_s6 + $0x4] sm:$0xf] }
  0x23   : > { %v273_v41 = vrot.slane %v272_v31, 4  ;;  %v283_v42 = vrot.slane %v282_v32, 4  ;;  %v329_v43 = vrot.slane %v327_v33, 4  ;;  %v335_v44 = vrot.slane %v333_v34, 5  ;;  %v3092_v8 = vld [vmem:[%s3041_s6 + $0x8] sm:$0x1] }
  0x24   : > { %v320_v45 = vor.u32 %v319_v37, %v316_v28  ;;  %v364_v47 = vrot.slane %v362_v39, 4  ;;  %v367_v48 = vrot.slane %v365_v40, 5  ;;  %v371_v49 = vshll.u32 %v3065_v35, 16  ;;  %v195_v15 = vld [vmem:[%s3041_s6 + $0x24] sm:$0xf]  ;;  %s2719_s11 = sshll.u32 %s2314_s10, 3 }
  0x25   : > { %v278_v50 = vsel %vm3069_vm4, %v273_v41, %v277_v24  ;;  %v288_v51 = vsel %vm3069_vm4, %v283_v42, %v287_v27  ;;  %v330_v52 = vor.u32 %v329_v43, %v325_v38  ;;  %v375_v53 = vshrl.u32 %v3065_v35, 16  ;;  %v3103_v26 = vld [vmem:[%s3041_s6 + $0x28] sm:$0xf]  ;;  %v3108_v30 = vld [vmem:[%s3041_s6 + $0x2c] sm:$0x1]  ;;  %s2316_s20 = scalar_lea.hbm %s3868_s3, %s2719_s11  ;;  %s2846_s8 = scalar_lea.hbm %s3868_s3, 512 }
  0x26   : > { %v415_v55 = vunpack.c.l.b16 %v278_v50  ;;  %v416_v56 = vunpack.c.l.b16 %v288_v51  ;;  %v321_v57 = vrot.slane %v320_v45, 4  ;;  %v368_v58 = vor.u32 %v367_v48, %v364_v47  ;;  %v3116_v51 = vld [vmem:[%s3041_s6 + $0x40] sm:$0xf]  ;;  %s2319_s24 = sshll.u32 %s2316_s20, 4  ;;  %s2320_s24 = int_to_ptr.hbm [resolvable:$true] %s2319_s24 }
  0x27   : > { %v331_v59 = vrot.slane %v330_v52, 4  ;;  %v373_v60 = vrot.slane %v371_v49, 5  ;;  %v377_v61 = vrot.slane %v375_v53, 4  ;;  %v381_v62 = vshll.u32 %v3074_v46, 16  ;;  %s2840_s29 = sshra.s32 %s2320_s24, 4  ;;  %s2841_s29 = int_to_ptr.hbm [resolvable:$true] %s2840_s29 }
  0x28   : > { %v429_v63 = vpack.c.b16 %v416_v56, %v415_v55  ;;  %v326_v0 = vsel %vm3069_vm4, %v321_v57, %v325_v38  ;;  %v369_v1 = vrot.slane %v368_v58, 4  ;;  %v218_v3 = vshrl.u32 %v189_v54, 16  ;;  %v199_v38 = vld [vmem:[%s3041_s6 + $0x3c] sm:$0xf]  ;;  %v3122_v56 = vld [vmem:[%s3041_s6 + $0x44] sm:$0x1]  ;;  %p2847_p2 = scmp.lt.s32.totalorder %s2841_s29, %s3868_s3 }
  0x29   : > { %v336_v4 = vsel %vm3069_vm4, %v331_v59, %v335_v44  ;;  %v419_v5 = vunpack.c.l.b16 %v326_v0  ;;  %v378_v6 = vor.u32 %v377_v61, %v373_v60  ;;  %v383_v7 = vrot.slane %v381_v62, 5  ;;  %v203_v58 = vld [vmem:[%s3041_s6 + $0x54] sm:$0xf]  ;;  %s2842_s4 = scalar_lea.hbm %s2841_s29, 128 }
  0x2a   : > { %2419 = vmatmul.msk.bf16.vlgmr.msra.gmra.mxu1 %vm435_vm3, %v429_v63  ;;  %v420_v9 = vunpack.c.l.b16 %v336_v4  ;;  %v374_v10 = vsel %vm3069_vm4, %v369_v1, %v373_v60  ;;  %v220_v13 = vrot.slane %v218_v3, 4  ;;  %v221_v14 = vshll.u32 %v189_v54, 16  ;;  %p2843_p13 = scmp.ne.s32.totalorder %s2841_s29, %s2842_s4  ;;  %p2848_p4 = scmp.lt.s32.totalorder %s2846_s8, %s2842_s4 }
  0x2b   : > { %v379_v16 = vrot.slane %v378_v6, 4  ;;  %v423_v17 = vunpack.c.l.b16 %v374_v10  ;;  %v227_v18 = vshll.u32 %v3087_v2, 16  ;;  %v231_v21 = vshrl.u32 %v3087_v2, 16 }
  0x2c   : > { %v431_v22 = vpack.c.b16 %v420_v9, %v419_v5  ;;  %v223_v23 = vrot.slane %v221_v14, 5  ;;  %v237_v24 = vshll.u32 %v3092_v8, 16  ;;  %v661_v25 = vrot.slane %v3092_v8, 5  ;;  %p2844_p0 = pnand %p2843_p13, %p2995_p3  ;;  %p2849_p5 = por %p2848_p4, %p2847_p2 }
  0x2d   : > { %v384_v27 = vsel %vm3069_vm4, %v379_v16, %v383_v7  ;;  %v229_v28 = vrot.slane %v227_v18, 5  ;;  %v233_v29 = vrot.slane %v231_v21, 4  ;;  %v290_v31 = vshrl.u32 %v195_v15, 16  ;;  %v3136_v16 = vld [vmem:[%s3041_s6 + $0x5c] sm:$0x1] }
  0x2e   : > { %2421 = vmatmul.msk.bf16.vlgmr.msra.gmra.mxu2 %vm435_vm3, %v431_v22  ;;  %v424_v32 = vunpack.c.l.b16 %v384_v27  ;;  %v224_v33 = vor.u32 %v223_v23, %v220_v13  ;;  %v239_v34 = vrot.slane %v237_v24, 5  ;;  %v293_v37 = vshll.u32 %v195_v15, 16  ;;  %v3133_v15 = vld [vmem:[%s3041_s6 + $0x58] sm:$0xf]  ;;  %v191_v23 = vld [vmem:[%s3041_s6 + $0xc] sm:$0xf]  ;;  %p2845_p1 = pneg %p2844_p0 }
  0x2f   : > { %v234_v39 = vor.u32 %v233_v29, %v229_v28  ;;  %v292_v40 = vrot.slane %v290_v31, 4  ;;  %v299_v41 = vshll.u32 %v3103_v26, 16  ;;  %v303_v42 = vshrl.u32 %v3103_v26, 16 }
  0x30   : > { %v433_v43 = vpack.c.b16 %v424_v32, %v423_v17  ;;  %v225_v44 = vrot.slane %v224_v33, 4  ;;  %v295_v45 = vrot.slane %v293_v37, 5  ;;  %v309_v47 = vshll.u32 %v3108_v30, 16  ;;  %p2850_p6 = pnand %p2849_p5, %p2845_p1 }
  0x31   : > { %v235_v48 = vrot.slane %v234_v39, 4  ;;  %v301_v49 = vrot.slane %v299_v41, 5  ;;  %v305_v50 = vrot.slane %v303_v42, 4  ;;  %v338_v52 = vshrl.u32 %v199_v38, 16 }
  0x32   : > { %2423 = vmatmul.msk.bf16.vlgmr.msra.gmra.mxu3 %vm435_vm3, %v433_v43  ;;  %v230_v53 = vsel %vm3069_vm4, %v225_v44, %v229_v28  ;;  %v296_v54 = vor.u32 %v295_v45, %v292_v40  ;;  %v311_v55 = vrot.slane %v309_v47, 5  ;;  %v341_v57 = vshll.u32 %v199_v38, 16  ;;  %v3148_v40 = vld [vmem:[%s3041_s6 + $0x10] sm:$0xf]  ;;  %v3151_v47 = vld [vmem:[%s3041_s6 + $0x14] sm:$0x1] }
  0x33   : > { %v240_v59 = vsel %vm3069_vm4, %v235_v48, %v239_v34  ;;  %v411_v60 = vunpack.c.l.b16 %v230_v53  ;;  %v306_v61 = vor.u32 %v305_v50, %v301_v49  ;;  %v340_v62 = vrot.slane %v338_v52, 4 }
  0x34   : > { %v412_v63 = vunpack.c.l.b16 %v240_v59  ;;  %v297_v0 = vrot.slane %v296_v54, 4  ;;  %v343_v1 = vrot.slane %v341_v57, 5  ;;  %v347_v3 = vshll.u32 %v3116_v51, 16 }
  0x35   : > { %v307_v4 = vrot.slane %v306_v61, 4  ;;  %v351_v5 = vshrl.u32 %v3116_v51, 16  ;;  %v357_v6 = vshll.u32 %v3122_v56, 16  ;;  %v386_v7 = vshrl.u32 %v203_v58, 16 }
  0x36   : > { %v427_v9 = vpack.c.b16 %v412_v63, %v411_v60  ;;  %v302_v10 = vsel %vm3069_vm4, %v297_v0, %v301_v49  ;;  %v344_v13 = vor.u32 %v343_v1, %v340_v62  ;;  %v349_v14 = vrot.slane %v347_v3, 5  ;;  %v629_v1 = vld [vmem:[%s3041_s6] sm:$0xe] }
  0x37   : > { %v312_v17 = vsel %vm3069_vm4, %v307_v4, %v311_v55  ;;  %v417_v18 = vunpack.c.l.b16 %v302_v10  ;;  %v353_v21 = vrot.slane %v351_v5, 4  ;;  %v359_v22 = vrot.slane %v357_v6, 5 }
  0x38   : > { %2417 = vmatmul.msk.bf16.vlgmr.msra.gmra.mxu0 %vm435_vm3, %v427_v9  ;;  %v418_v24 = vunpack.c.l.b16 %v312_v17  ;;  %v345_v27 = vrot.slane %v344_v13, 4  ;;  %v388_v28 = vrot.slane %v386_v7, 4  ;;  %v389_v29 = vshll.u32 %v203_v58, 16  ;;  %v2617_v7 = vld [vmem:[%s3866_s1 + $0xc] sm:$0x3] }
  0x39   : > { %v354_v31 = vor.u32 %v353_v21, %v349_v14  ;;  %v395_v32 = vshll.u32 %v3133_v15, 16  ;;  %v399_v33 = vshrl.u32 %v3133_v15, 16  ;;  %v405_v34 = vshll.u32 %v3136_v16, 16  ;;  %v2541_v9 = vld [vmem:[%s3041_s6 + $0xc] sm:$0xf] }
  0x3a   : > { %v430_v37 = vpack.c.b16 %v418_v24, %v417_v18  ;;  %v350_v38 = vsel %vm3069_vm4, %v345_v27, %v349_v14  ;;  %v391_v39 = vrot.slane %v389_v29, 5  ;;  %v242_v41 = vshrl.u32 %v191_v23, 16  ;;  %v3172_v27 = vld [vmem:[%s3041_s6 + $0x10] sm:$0xf] }
  0x3b   : > { %v355_v42 = vrot.slane %v354_v31, 4  ;;  %v421_v43 = vunpack.c.l.b16 %v350_v38  ;;  %v397_v44 = vrot.slane %v395_v32, 5  ;;  %v401_v45 = vrot.slane %v399_v33, 4 }
  0x3c   : > { %2420 = vmatmul.msk.bf16.gmra.mxu1 %vm435_vm3, %v430_v37  ;;  %v392_v48 = vor.u32 %v391_v39, %v388_v28  ;;  %v407_v49 = vrot.slane %v405_v34, 5  ;;  %v244_v50 = vrot.slane %v242_v41, 4  ;;  %v245_v52 = vshll.u32 %v191_v23, 16  ;;  %v3182_v37 = vld [vmem:[%s3041_s6 + $0x14] sm:$0x1] }
  0x3d   : > { %v360_v53 = vsel %vm3069_vm4, %v355_v42, %v359_v22  ;;  %v402_v54 = vor.u32 %v401_v45, %v397_v44  ;;  %v251_v55 = vshll.u32 %v3148_v40, 16  ;;  %v255_v57 = vshrl.u32 %v3148_v40, 16  ;;  %v2682_v41 = vld [vmem:[%s3866_s1 + $0xe] sm:$0x3]  ;;  %v2590_v45 = vld [vmem:[%s3866_s1 + $0xa] sm:$0x3] }
  0x3e   : > { %v422_v58 = vunpack.c.l.b16 %v360_v53  ;;  %v393_v59 = vrot.slane %v392_v48, 4  ;;  %v247_v60 = vrot.slane %v245_v52, 5  ;;  %v261_v61 = vshll.u32 %v3151_v47, 16  ;;  %v2707_v53 = vld [vmem:[%s3866_s1 + $0x10] sm:$0x3] }
  0x3f   : > { %v403_v62 = vrot.slane %v402_v54, 4  ;;  %v253_v63 = vrot.slane %v251_v55, 5  ;;  %v257_v0 = vrot.slane %v255_v57, 4  ;;  %v2465_v21 = vrot.slane %v629_v1, 9  ;;  %v2723_v55 = vld [vmem:[%s3041_s6] sm:$0xff] }
  0x40   : > { %v432_v3 = vpack.c.b16 %v422_v58, %v421_v43  ;;  %v398_v4 = vsel %vm3069_vm4, %v393_v59, %v397_v44  ;;  %v248_v5 = vor.u32 %v247_v60, %v244_v50  ;;  %v263_v6 = vrot.slane %v261_v61, 5 }
  0x41   : > { %v408_v10 = vsel %vm3069_vm4, %v403_v62, %v407_v49  ;;  %v425_v13 = vunpack.c.l.b16 %v398_v4  ;;  %v258_v14 = vor.u32 %v257_v0, %v253_v63  ;;  %v658_v22 = vrot.slane %v3087_v2, 5  ;;  %v3213_v4 = vld [vmem:[%s3041_s6 + $0x1c] sm:$0xf] }
  0x42   : > { %2422 = vmatmul.msk.bf16.gmra.mxu2 %vm435_vm3, %v432_v3  ;;  %v426_v17 = vunpack.c.l.b16 %v408_v10  ;;  %v249_v18 = vrot.slane %v248_v5, 4  ;;  %v1611_v24 = vsel %vm460_vm0, %v2617_v7, 0  ;;  %v1009_v28 = vshrl.u32 %v2541_v9, 16  ;;  %v2544_v3 = vld [vmem:[%s3041_s6 + $0x18] sm:$0xf] }
  0x43   : > { %v259_v23 = vrot.slane %v258_v14, 4  ;;  %v1012_v29 = vshll.u32 %v2541_v9, 16  ;;  %v660_v34 = vrot.slane %v658_v22, 4  ;;  %1620 = vmatpush.bf16.msra.mxu2 %v1611_v24  ;;  %v1018_v44 = vshll.u32 %v3172_v27, 16  ;;  %v631_v5 = vld [vmem:[%s3041_s6 + $0x18] sm:$0xe] }
  0x44   : > { %v434_v31 = vpack.c.b16 %v426_v17, %v425_v13  ;;  %v254_v32 = vsel %vm3069_vm4, %v249_v18, %v253_v63  ;;  %v1011_v39 = vrot.slane %v1009_v28, 4  ;;  %v659_v48 = vsel %vm3177_vm7, %v2465_v21, %v658_v22  ;;  %v630_v7 = vld [vmem:[%s3041_s6 + $0xc] sm:$0xe] }
  0x45   : > { %v264_v2 = vsel %vm3069_vm4, %v259_v23, %v263_v6  ;;  %v413_v38 = vunpack.c.l.b16 %v254_v32  ;;  %v1014_v43 = vrot.slane %v1012_v29, 5  ;;  %v662_v49 = vsel %vm3177_vm7, %v660_v34, %v661_v25  ;;  %v2731_v34 = vld [vmem:[%s3041_s6 + $0xc] sm:$0xff] }
  0x46   : > { %2424 = vmatmul.msk.bf16.gmra.mxu3 %vm435_vm3, %v434_v31  ;;  %v414_v42 = vunpack.c.l.b16 %v264_v2  ;;  %v1022_v50 = vshrl.u32 %v3172_v27, 16  ;;  %v1028_v52 = vshll.u32 %v3182_v37, 16  ;;  %v1020_v58 = vrot.slane %v1018_v44, 5 }
  0x47   : > { %v1015_v57 = vor.u32 %v1014_v43, %v1011_v39  ;;  %v1945_v59 = vsel %vm460_vm0, %v2682_v41, 0  ;;  %v1457_v25 = vsel %vm460_vm0, %v2590_v45, 0  ;;  %v714_v60 = vunpack.c.l.b16 %v659_v48 }
  0x48   : > { %v428_v54 = vpack.c.b16 %v414_v42, %v413_v38  ;;  %v1024_v8 = vrot.slane %v1022_v50, 4  ;;  %1954 = vmatpush.bf16.msra.mxu3 %v1945_v59  ;;  %v715_v61 = vunpack.c.l.b16 %v662_v49  ;;  %1466 = vmatpush.bf16.msra.mxu1 %v1457_v25  ;;  %v2151_v63 = vsel %vm460_vm0, %v2707_v53, 0 }
  0x49   : > { %v1016_v62 = vrot.slane %v1015_v57, 4  ;;  %v1030_v1 = vrot.slane %v1028_v52, 5  ;;  %2160 = vmatpush.bf16.msra.mxu0 %v2151_v63  ;;  %v665_v9 = vrot.slane %v3148_v40, 5  ;;  %v1033_v14 = vshrl.u32 %v2544_v3, 16  ;;  %v632_v63 = vld [vmem:[%s3041_s6 + $0x24] sm:$0xe] }
  0x4a   : > { %2418 = vmatmul.msk.bf16.gmra.mxu0 %vm435_vm3, %v428_v54  ;;  %v1025_v0 = vor.u32 %v1024_v8, %v1020_v58  ;;  %v730_v10 = vpack.c.b16 %v715_v61, %v714_v60  ;;  %v1036_v17 = vshll.u32 %v2544_v3, 16  ;;  %v1042_v21 = vshll.u32 %v3213_v4, 16  ;;  %v2547_v61 = vld [vmem:[%s3041_s6 + $0x24] sm:$0xf] }
  0x4b   : > { %v1021_v13 = vsel %vm3069_vm4, %v1016_v62, %v1020_v58  ;;  %v1046_v22 = vshrl.u32 %v3213_v4, 16  ;;  %v2467_v23 = vrot.slane %v631_v5, 9  ;;  %v2466_v24 = vrot.slane %v630_v7, 9  ;;  %v3247_v62 = vld [vmem:[%s3041_s6 + $0x28] sm:$0xf] }
  0x4c   : > { %2457 = vmatmul.msk.bf16.vlgmr.msrb.gmra.mxu1 %vm435_vm3, %v2723_v55  ;;  %v1026_v6 = vrot.slane %v1025_v0, 4  ;;  %v672_v28 = vrot.slane %v3045_v11, 5  ;;  %v1202_v40 = vunpack.c.l.b16 %v1021_v13  ;;  %v667_v29 = vrot.slane %v665_v9, 4  ;;  %v3232_v11 = vld [vmem:[%s3041_s6 + $0x20] sm:$0x1]  ;;  %v2724_v55 = vld [vmem:[%s3041_s6 + $0xc] sm:$0xff] }
  0x4d   : > { %v668_v31 = vrot.slane %v3151_v47, 5  ;;  %v675_v32 = vrot.slane %v3048_v12, 5  ;;  %v1035_v38 = vrot.slane %v1033_v14, 4  ;;  %v1038_v39 = vrot.slane %v1036_v17, 5 }
  0x4e   : > { %v1031_v18 = vsel %vm3069_vm4, %v1026_v6, %v1030_v1  ;;  %v673_v41 = vsel %vm3177_vm7, %v2467_v23, %v672_v28  ;;  %v1044_v42 = vrot.slane %v1042_v21, 5  ;;  %v1048_v43 = vrot.slane %v1046_v22, 4  ;;  %v2732_v22 = vld [vmem:[%s3041_s6 + $0x18] sm:$0xff] }
  0x4f   : > { %v1203_v2 = vunpack.c.l.b16 %v1031_v18  ;;  %v674_v44 = vrot.slane %v672_v28, 4  ;;  %v718_v45 = vunpack.c.l.b16 %v673_v41  ;;  %v666_v47 = vsel %vm3177_vm7, %v2466_v24, %v665_v9 }
  0x50   : > { %v669_v49 = vsel %vm3177_vm7, %v667_v29, %v668_v31  ;;  %v1039_v50 = vor.u32 %v1038_v39, %v1035_v38  ;;  %v1049_v53 = vor.u32 %v1048_v43, %v1044_v42  ;;  %v1052_v54 = vshll.u32 %v3232_v11, 16  ;;  %v2550_v43 = vld [vmem:[%s3041_s6 + $0x30] sm:$0xf] }
  0x51   : > { %v676_v12 = vsel %vm3177_vm7, %v674_v44, %v675_v32  ;;  %v1218_v48 = vpack.c.b16 %v1203_v2, %v1202_v40  ;;  %v716_v58 = vunpack.c.l.b16 %v666_v47  ;;  %v717_v59 = vunpack.c.l.b16 %v669_v49  ;;  %v3273_v44 = vld [vmem:[%s3041_s6 + $0x34] sm:$0xf] }
  0x52   : > { %2474 = vmatmul.msk.bf16.vlgmr.msrb.gmra.mxu2 %vm435_vm3, %v730_v10  ;;  %v719_v52 = vunpack.c.l.b16 %v676_v12  ;;  %v1040_v8 = vrot.slane %v1039_v50, 4  ;;  %v1050_v25 = vrot.slane %v1049_v53, 4  ;;  %v1054_v60 = vrot.slane %v1052_v54, 5 }
  0x53   : > { %v679_v0 = vrot.slane %v3103_v26, 5  ;;  %v682_v1 = vrot.slane %v3108_v30, 5  ;;  %v731_v3 = vpack.c.b16 %v717_v59, %v716_v58  ;;  %v2468_v5 = vrot.slane %v632_v63, 9  ;;  %v3285_v63 = vld [vmem:[%s3041_s6 + $0x38] sm:$0x1] }
  0x54   : > { %v732_v57 = vpack.c.b16 %v719_v52, %v718_v45  ;;  %v1045_v6 = vsel %vm3069_vm4, %v1040_v8, %v1044_v42  ;;  %v1057_v7 = vshrl.u32 %v2547_v61, 16  ;;  %v1060_v9 = vshll.u32 %v2547_v61, 16  ;;  %v2725_v42 = vld [vmem:[%s3041_s6 + $0x18] sm:$0xff] }
  0x55   : > { %v681_v10 = vrot.slane %v679_v0, 4  ;;  %v1055_v13 = vsel %vm3069_vm4, %v1050_v25, %v1054_v60  ;;  %v1066_v14 = vshll.u32 %v3247_v62, 16  ;;  %v1070_v17 = vshrl.u32 %v3247_v62, 16  ;;  %v2733_v25 = vld [vmem:[%s3041_s6 + $0x24] sm:$0xff] }
  0x56   : > { %2533 = vmatmul.msk.bf16.vlgmr.msrb.gmra.mxu3 %vm435_vm3, %v2731_v34  ;;  %v680_v26 = vsel %vm3177_vm7, %v2468_v5, %v679_v0  ;;  %v1204_v23 = vunpack.c.l.b16 %v1045_v6  ;;  %v1205_v24 = vunpack.c.l.b16 %v1055_v13  ;;  %v1059_v28 = vrot.slane %v1057_v7, 4  ;;  %v3265_v34 = vld [vmem:[%s3041_s6 + $0x2c] sm:$0x1]  ;;  %v2726_v6 = vld [vmem:[%s3041_s6 + $0x24] sm:$0xff]  ;;  %v3293_v13 = vld [vmem:[%s3041_s6 + $0x40] sm:$0xf] }
  0x57   : > { %v683_v30 = vsel %vm3177_vm7, %v681_v10, %v682_v1  ;;  %v720_v18 = vunpack.c.l.b16 %v680_v26  ;;  %v1062_v40 = vrot.slane %v1060_v9, 5  ;;  %v1068_v29 = vrot.slane %v1066_v14, 5  ;;  %v633_v26 = vld [vmem:[%s3041_s6 + $0x30] sm:$0xe] }
  0x58   : > { %v721_v21 = vunpack.c.l.b16 %v683_v30  ;;  %v1072_v31 = vrot.slane %v1070_v17, 4  ;;  %v1219_v2 = vpack.c.b16 %v1205_v24, %v1204_v23  ;;  %v1076_v41 = vshll.u32 %v3265_v34, 16 }
  0x59   : > { %v1063_v38 = vor.u32 %v1062_v40, %v1059_v28  ;;  %v1084_v49 = vshll.u32 %v2550_v43, 16  ;;  %v1090_v50 = vshll.u32 %v3273_v44, 16  ;;  %v1094_v52 = vshrl.u32 %v3273_v44, 16 }
  0x5a   : > { %2566 = vmatmul.msk.bf16.vlgmr.msrb.gmra.mxu0 %vm435_vm3, %v1218_v48  ;;  %v733_v32 = vpack.c.b16 %v721_v21, %v720_v18  ;;  %v1073_v39 = vor.u32 %v1072_v31, %v1068_v29  ;;  %v1078_v12 = vrot.slane %v1076_v41, 5  ;;  %v1081_v48 = vshrl.u32 %v2550_v43, 16  ;;  %v3308_v43 = vld [vmem:[%s3041_s6 + $0x44] sm:$0x1] }
  0x5b   : > { %v1064_v45 = vrot.slane %v1063_v38, 4  ;;  %v1086_v58 = vrot.slane %v1084_v49, 5  ;;  %v1092_v59 = vrot.slane %v1090_v50, 5  ;;  %v1096_v8 = vrot.slane %v1094_v52, 4  ;;  %v2727_v49 = vld [vmem:[%s3041_s6 + $0x30] sm:$0xff] }
  0x5c   : > { %2458 = vmatmul.msk.bf16.gmra.mxu1 %vm435_vm3, %v2724_v55  ;;  %v1074_v47 = vrot.slane %v1073_v39, 4  ;;  %v1083_v55 = vrot.slane %v1081_v48, 4  ;;  %v1114_v21 = vshll.u32 %v3293_v13, 16  ;;  %v686_v23 = vrot.slane %v3055_v19, 5 }
  0x5d   : > { %v1069_v53 = vsel %vm3069_vm4, %v1064_v45, %v1068_v29  ;;  %v1097_v1 = vor.u32 %v1096_v8, %v1092_v59  ;;  %v2469_v40 = vrot.slane %v633_v26, 9  ;;  %v2734_v29 = vld [vmem:[%s3041_s6 + $0x30] sm:$0xff] }
  0x5e   : > { %v1079_v54 = vsel %vm3069_vm4, %v1074_v47, %v1078_v12  ;;  %v1206_v60 = vunpack.c.l.b16 %v1069_v53  ;;  %v1087_v0 = vor.u32 %v1086_v58, %v1083_v55  ;;  %v1116_v38 = vrot.slane %v1114_v21, 5  ;;  %v2556_v55 = vld [vmem:[%s3041_s6 + $0x48] sm:$0xf]  ;;  %v3321_v58 = vld [vmem:[%s3041_s6 + $0x4c] sm:$0xf] }
  0x5f   : > { %v1207_v61 = vunpack.c.l.b16 %v1079_v54  ;;  %v1098_v9 = vrot.slane %v1097_v1, 4  ;;  %v688_v41 = vrot.slane %v686_v23, 4  ;;  %v687_v19 = vsel %vm3177_vm7, %v2469_v40, %v686_v23  ;;  %v2728_v40 = vld [vmem:[%s3041_s6 + $0x3c] sm:$0xff] }
  0x60   : > { %v1088_v7 = vrot.slane %v1087_v0, 4  ;;  %v1124_v12 = vshll.u32 %v3308_v43, 16  ;;  %v1129_v0 = vshrl.u32 %v2556_v55, 16  ;;  %v1132_v1 = vshll.u32 %v2556_v55, 16 }
  0x61   : > { %v1220_v5 = vpack.c.b16 %v1207_v61, %v1206_v60  ;;  %v693_v60 = vrot.slane %v3116_v51, 5  ;;  %v634_v61 = vld [vmem:[%s3041_s6 + $0x3c] sm:$0xe] }
  0x62   : > { %2475 = vmatmul.msk.bf16.gmra.mxu2 %vm435_vm3, %v731_v3  ;;  %v1100_v3 = vshll.u32 %v3285_v63, 16  ;;  %v1093_v14 = vsel %vm3069_vm4, %v1088_v7, %v1092_v59  ;;  %v1126_v54 = vrot.slane %v1124_v12, 5  ;;  %v2735_v7 = vld [vmem:[%s3041_s6 + $0x3c] sm:$0xff]  ;;  %v1134_v51 = vrot.slane %v1132_v1, 5 }
  0x63   : > { %v1208_v24 = vunpack.c.l.b16 %v1093_v14  ;;  %v696_v14 = vrot.slane %v3122_v56, 5  ;;  %v3362_v1 = vld [vmem:[%s3041_s6 + $0x5c] sm:$0x1] }
  0x64   : > { %v1102_v10 = vrot.slane %v1100_v3, 5  ;;  %v1138_v3 = vshll.u32 %v3321_v58, 16 }
  0x66   : > { %2534 = vmatmul.msk.bf16.gmra.mxu3 %vm435_vm3, %v2732_v22  ;;  %v1103_v17 = vsel %vm3069_vm4, %v1098_v9, %v1102_v10  ;;  %v1118_v22 = vshrl.u32 %v3293_v13, 16  ;;  %v2470_v10 = vrot.slane %v634_v61, 9  ;;  %v1140_v26 = vrot.slane %v1138_v3, 5 }
  0x67   : > { %v1209_v28 = vunpack.c.l.b16 %v1103_v17  ;;  %v1131_v17 = vrot.slane %v1129_v0, 4  ;;  %v703_v61 = vrot.slane %v3074_v46, 5  ;;  %v1172_v46 = vshll.u32 %v3362_v1, 16 }
  0x68   : > { %v1120_v39 = vrot.slane %v1118_v22, 4  ;;  %v694_v22 = vsel %vm3177_vm7, %v2470_v10, %v693_v60  ;;  %v2729_v10 = vld [vmem:[%s3041_s6 + $0x48] sm:$0xff] }
  0x69   : > { %v1221_v45 = vpack.c.b16 %v1209_v28, %v1208_v24  ;;  %v1135_v24 = vor.u32 %v1134_v51, %v1131_v17 }
  0x6a   : > { %2567 = vmatmul.msk.bf16.gmra.mxu0 %vm435_vm3, %v1219_v2  ;;  %v1121_v47 = vor.u32 %v1120_v39, %v1116_v38 }
  0x6c   : > { %2459 = vmatmul.msk.bf16.gmra.mxu1 %vm435_vm3, %v2725_v42  ;;  %v689_v42 = vrot.slane %v3058_v20, 5  ;;  %v722_v20 = vunpack.c.l.b16 %v687_v19  ;;  %v1122_v53 = vrot.slane %v1121_v47, 4 }
  0x6e   : > { %v690_v48 = vsel %vm3177_vm7, %v688_v41, %v689_v42  ;;  %v3347_v42 = vld [vmem:[%s3041_s6 + $0x58] sm:$0xf] }
  0x6f   : > { %v723_v50 = vunpack.c.l.b16 %v690_v48  ;;  %v1162_v47 = vshll.u32 %v3347_v42, 16 }
  0x71   : > { %v734_v59 = vpack.c.b16 %v723_v50, %v722_v20  ;;  %v1166_v20 = vshrl.u32 %v3347_v42, 16  ;;  %v635_v50 = vld [vmem:[%s3041_s6 + $0x48] sm:$0xe] }
  0x72   : > { %2476 = vmatmul.msk.bf16.gmra.mxu2 %vm435_vm3, %v732_v57  ;;  %v2553_v57 = vld [vmem:[%s3041_s6 + $0x3c] sm:$0xf] }
  0x73   : > { %v1105_v30 = vshrl.u32 %v2553_v57, 16  ;;  %v1108_v18 = vshll.u32 %v2553_v57, 16  ;;  %v695_v57 = vrot.slane %v693_v60, 4  ;;  %v1168_v0 = vrot.slane %v1166_v20, 4 }
  0x75   : > { %v1107_v31 = vrot.slane %v1105_v30, 4  ;;  %v1110_v2 = vrot.slane %v1108_v18, 5  ;;  %v3335_v18 = vld [vmem:[%s3041_s6 + $0x50] sm:$0x1]  ;;  %v697_v23 = vsel %vm3177_vm7, %v695_v57, %v696_v14 }
  0x76   : > { %2535 = vmatmul.msk.bf16.gmra.mxu3 %vm435_vm3, %v2733_v25  ;;  %v1127_v25 = vsel %vm3069_vm4, %v1122_v53, %v1126_v54  ;;  %v1148_v56 = vshll.u32 %v3335_v18, 16  ;;  %v2736_v54 = vld [vmem:[%s3041_s6 + $0x48] sm:$0xff] }
  0x77   : > { %v1211_v9 = vunpack.c.l.b16 %v1127_v25  ;;  %v2471_v25 = vrot.slane %v635_v50, 9  ;;  %v3395_v50 = vld [vmem:[%s3041_s6 + $0x68] sm:$0x1] }
  0x78   : > { %v1150_v41 = vrot.slane %v1148_v56, 5 }
  0x7a   : > { %2568 = vmatmul.msk.bf16.gmra.mxu0 %vm435_vm3, %v1220_v5  ;;  %v1142_v5 = vshrl.u32 %v3321_v58, 16 }
  0x7c   : > { %2460 = vmatmul.msk.bf16.gmra.mxu1 %vm435_vm3, %v2726_v6  ;;  %v1144_v30 = vrot.slane %v1142_v5, 4 }
  0x7e   : > { %v1145_v28 = vor.u32 %v1144_v30, %v1140_v26  ;;  %v2562_v30 = vld [vmem:[%s3041_s6 + $0x60] sm:$0xf] }
  0x80   : > { %v1146_v39 = vrot.slane %v1145_v28, 4  ;;  %v1180_v28 = vshll.u32 %v2562_v30, 16 }
  0x82   : > { %2477 = vmatmul.msk.bf16.gmra.mxu2 %vm435_vm3, %v733_v32  ;;  %v1111_v32 = vor.u32 %v1110_v2, %v1107_v31  ;;  %v725_v31 = vunpack.c.l.b16 %v697_v23  ;;  %v2559_v2 = vld [vmem:[%s3041_s6 + $0x54] sm:$0xf]  ;;  %v1151_v48 = vsel %vm3069_vm4, %v1146_v39, %v1150_v41 }
  0x83   : > { %v1156_v19 = vshll.u32 %v2559_v2, 16 }
  0x84   : > { %v1112_v52 = vrot.slane %v1111_v32, 4 }
  0x85   : > { %v1158_v53 = vrot.slane %v1156_v19, 5 }
  0x86   : > { %2536 = vmatmul.msk.bf16.gmra.mxu3 %vm435_vm3, %v2734_v29  ;;  %v1117_v8 = vsel %vm3069_vm4, %v1112_v52, %v1116_v38  ;;  %v724_v29 = vunpack.c.l.b16 %v694_v22  ;;  %v1136_v38 = vrot.slane %v1135_v24, 4  ;;  %v1177_v24 = vshrl.u32 %v2562_v30, 16 }
  0x87   : > { %v1210_v6 = vunpack.c.l.b16 %v1117_v8  ;;  %v1164_v8 = vrot.slane %v1162_v47, 5  ;;  %v1182_v47 = vrot.slane %v1180_v28, 5 }
  0x88   : > { %v735_v32 = vpack.c.b16 %v725_v31, %v724_v29  ;;  %v1141_v12 = vsel %vm3069_vm4, %v1136_v38, %v1140_v26  ;;  %v1174_v26 = vrot.slane %v1172_v46, 5  ;;  %v707_v31 = vrot.slane %v3133_v15, 5  ;;  %v636_v38 = vld [vmem:[%s3041_s6 + $0x54] sm:$0xe] }
  0x89   : > { %v1222_v21 = vpack.c.b16 %v1211_v9, %v1210_v6  ;;  %v1212_v55 = vunpack.c.l.b16 %v1141_v12  ;;  %v1169_v9 = vor.u32 %v1168_v0, %v1164_v8  ;;  %v710_v15 = vrot.slane %v3136_v16, 5  ;;  %v2730_v0 = vld [vmem:[%s3041_s6 + $0x54] sm:$0xff] }
  0x8a   : > { %2569 = vmatmul.msk.bf16.gmra.mxu0 %vm435_vm3, %v1221_v45  ;;  %v1153_v45 = vshrl.u32 %v2559_v2, 16 }
  0x8b   : > { %v1170_v51 = vrot.slane %v1169_v9, 4 }
  0x8c   : > { %2461 = vmatmul.msk.bf16.gmra.mxu1 %vm435_vm3, %v2727_v49  ;;  %v700_v49 = vrot.slane %v3065_v35, 5  ;;  %v1155_v52 = vrot.slane %v1153_v45, 4  ;;  %v2737_v45 = vld [vmem:[%s3041_s6 + $0x54] sm:$0xff] }
  0x8e   : > { %v702_v60 = vrot.slane %v700_v49, 4  ;;  %v1159_v35 = vor.u32 %v1158_v53, %v1155_v52  ;;  %v701_v6 = vsel %vm3177_vm7, %v2471_v25, %v700_v49  ;;  %v709_v49 = vrot.slane %v707_v31, 4 }
  0x8f   : > { %v726_v14 = vunpack.c.l.b16 %v701_v6 }
  0x90   : > { %v1160_v57 = vrot.slane %v1159_v35, 4  ;;  %v711_v25 = vsel %vm3177_vm7, %v709_v49, %v710_v15  ;;  %v2738_v49 = vld [vmem:[%s3041_s6 + $0x60] sm:$0xff] }
  0x91   : > { %v729_v46 = vunpack.c.l.b16 %v711_v25 }
  0x92   : > { %2478 = vmatmul.msk.bf16.gmra.mxu2 %vm435_vm3, %v734_v59  ;;  %v1213_v59 = vunpack.c.l.b16 %v1151_v48  ;;  %v1165_v22 = vsel %vm3069_vm4, %v1160_v57, %v1164_v8  ;;  %v2472_v48 = vrot.slane %v636_v38, 9 }
  0x93   : > { %v1214_v39 = vunpack.c.l.b16 %v1165_v22  ;;  %v1355_v22 = vrot.slane %v3182_v37, 5 }
  0x94   : > { %v1223_v3 = vpack.c.b16 %v1213_v59, %v1212_v55  ;;  %v2658_v59 = vld [vmem:[%s3041_s6 + $0x18] sm:$0xf]  ;;  %v708_v8 = vsel %vm3177_vm7, %v2472_v48, %v707_v31 }
  0x95   : > { %v1703_v6 = vshrl.u32 %v2658_v59, 16  ;;  %v728_v9 = vunpack.c.l.b16 %v708_v8 }
  0x96   : > { %2537 = vmatmul.msk.bf16.gmra.mxu3 %vm435_vm3, %v2735_v7  ;;  %v704_v7 = vsel %vm3177_vm7, %v702_v60, %v703_v61  ;;  %v1196_v60 = vshll.u32 %v3395_v50, 16  ;;  %v3409_v61 = vld [vmem:[%s3041_s6 + $0x1c] sm:$0xf] }
  0x97   : > { %v727_v17 = vunpack.c.l.b16 %v704_v7  ;;  %v1706_v7 = vshll.u32 %v2658_v59, 16  ;;  %v1712_v57 = vshll.u32 %v3409_v61, 16  ;;  %v1705_v28 = vrot.slane %v1703_v6, 4 }
  0x98   : > { %v1198_v30 = vrot.slane %v1196_v60, 5  ;;  %v2046_v6 = vrot.slane %v3409_v61, 5 }
  0x99   : > { %v736_v23 = vpack.c.b16 %v727_v17, %v726_v14  ;;  %v1716_v14 = vshrl.u32 %v3409_v61, 16  ;;  %v1714_v31 = vrot.slane %v1712_v57, 5 }
  0x9a   : > { %2570 = vmatmul.msk.bf16.gmra.mxu0 %vm435_vm3, %v1222_v21  ;;  %v3376_v21 = vld [vmem:[%s3041_s6 + $0x64] sm:$0xf] }
  0x9b   : > { %v1186_v56 = vshll.u32 %v3376_v21, 16  ;;  %v1190_v2 = vshrl.u32 %v3376_v21, 16 }
  0x9c   : > { %2462 = vmatmul.msk.bf16.gmra.mxu1 %vm435_vm3, %v2728_v40  ;;  %v1175_v40 = vsel %vm3069_vm4, %v1170_v51, %v1174_v26 }
  0x9d   : > { %v1215_v19 = vunpack.c.l.b16 %v1175_v40  ;;  %v1188_v12 = vrot.slane %v1186_v56, 5  ;;  %v1192_v20 = vrot.slane %v1190_v2, 4  ;;  %v1708_v56 = vrot.slane %v1706_v7, 5 }
  0x9e   : > { %v737_v40 = vpack.c.b16 %v729_v46, %v728_v9  ;;  %v1718_v2 = vrot.slane %v1716_v14, 4  ;;  %v2661_v46 = vld [vmem:[%s3041_s6 + $0x24] sm:$0xf] }
  0x9f   : > { %v1193_v16 = vor.u32 %v1192_v20, %v1188_v12  ;;  %v1709_v48 = vor.u32 %v1708_v56, %v1705_v28  ;;  %v2575_v28 = vld [vmem:[%s3041_s6 + $0x18] sm:$0xe]  ;;  %v1727_v56 = vshrl.u32 %v2661_v46, 16 }
  0xa0   : > { %v1719_v20 = vor.u32 %v1718_v2, %v1714_v31 }
  0xa1   : > { %v1194_v26 = vrot.slane %v1193_v16, 4  ;;  %v1710_v25 = vrot.slane %v1709_v48, 4 }
  0xa2   : > { %2479 = vmatmul.msk.bf16.gmra.mxu2 %vm435_vm3, %v735_v32  ;;  %v1179_v32 = vrot.slane %v1177_v24, 4  ;;  %v1720_v60 = vrot.slane %v1719_v20, 4 }
  0xa3   : > { %v1199_v37 = vsel %vm3069_vm4, %v1194_v26, %v1198_v30  ;;  %v1359_v30 = vrot.slane %v3213_v4, 5 }
  0xa4   : > { %v1183_v55 = vor.u32 %v1182_v47, %v1179_v32 }
  0xa6   : > { %2538 = vmatmul.msk.bf16.gmra.mxu3 %vm435_vm3, %v2736_v54  ;;  %v1224_v54 = vpack.c.b16 %v1215_v19, %v1214_v39  ;;  %v1184_v51 = vrot.slane %v1183_v55, 4 }
  0xa7   : > { %v3365_v5 = vpop.f32.mrf.mxu1 }
  0xa8   : > { %v1189_v39 = vsel %vm3069_vm4, %v1184_v51, %v1188_v12  ;;  %v1217_v12 = vunpack.c.l.b16 %v1199_v37  ;;  %v1715_v51 = vsel %vm3069_vm4, %v1710_v25, %v1714_v31  ;;  %v1361_v37 = vrot.slane %v1359_v30, 4 }
  0xa9   : > { %v1216_v15 = vunpack.c.l.b16 %v1189_v39  ;;  %v2583_v39 = vrot.slane %v2575_v28, 9 }
  0xaa   : > { %2571 = vmatmul.msk.bf16.gmra.mxu0 %vm435_vm3, %v1223_v3  ;;  %v1352_v3 = vrot.slane %v3172_v27, 5 }
  0xab   : > { %v1225_v16 = vpack.c.b16 %v1217_v12, %v1216_v15  ;;  %v1729_v12 = vrot.slane %v1727_v56, 4 }
  0xac   : > { %2463 = vmatmul.msk.bf16.gmra.mxu1 %vm435_vm3, %v2729_v10  ;;  %v2574_v10 = vld [vmem:[%s3041_s6 + $0xc] sm:$0xe]  ;;  %v1354_v24 = vrot.slane %v1352_v3, 4 }
  0xae   : > { %v1356_v47 = vsel %vm3177_vm7, %v1354_v24, %v1355_v22 }
  0xaf   : > { %v3384_v29 = vpop.f32.mrf.mxu1  ;;  %v1409_v59 = vunpack.c.l.b16 %v1356_v47  ;;  %v1896_v47 = vunpack.c.l.b16 %v1715_v51 }
  0xb1   : > { %v3389_v41 = vpop.f32.mrf.mxu2 }
  0xb2   : > { %2480 = vmatmul.msk.bf16.gmra.mxu2 %vm435_vm3, %v736_v23  ;;  %v2582_v23 = vrot.slane %v2574_v10, 9  ;;  %v3449_v10 = vld [vmem:[%s3041_s6 + $0x28] sm:$0xf] }
  0xb3   : > { %v1736_v2 = vshll.u32 %v3449_v10, 16  ;;  %v1740_v31 = vshrl.u32 %v3449_v10, 16 }
  0xb4   : > { %v1353_v32 = vsel %vm3177_vm7, %v2582_v23, %v1352_v3  ;;  %v2691_v3 = vld [vmem:[%s3041_s6 + $0x18] sm:$0xe]  ;;  %v2048_v23 = vrot.slane %v2046_v6, 4 }
  0xb5   : > { %v3397_v52 = vpop.f32.mrf.mxu0  ;;  %v3399_v53 = vpop.f32.mrf.mxu3  ;;  %v1408_v55 = vunpack.c.l.b16 %v1353_v32  ;;  %v2699_v26 = vrot.slane %v2691_v3, 9  ;;  %v2739_v32 = vld [vmem:[%s3041_s6 + $0x18] sm:$0xff] }
  0xb6   : > { %2539 = vmatmul.msk.bf16.gmra.mxu3 %vm435_vm3, %v2737_v45  ;;  %v2660_v45 = vld [vmem:[%s3041_s6 + $0x20] sm:$0x1] }
  0xb7   : > { %v1424_v9 = vpack.c.b16 %v1409_v59, %v1408_v55  ;;  %v2049_v24 = vrot.slane %v2660_v45, 5  ;;  %v1742_v55 = vrot.slane %v1740_v31, 4  ;;  %v3475_v59 = vld [vmem:[%s3041_s6 + $0x2c] sm:$0x1] }
  0xb8   : > { %v1746_v51 = vshll.u32 %v3475_v59, 16 }
  0xb9   : > { %v3412_v35 = vpop.f32.mrf.mxu1  ;;  %v3419_v17 = vpop.f32.mrf.mxu2 }
  0xba   : > { %2572 = vmatmul.msk.bf16.gmra.mxu0 %vm435_vm3, %v1224_v54  ;;  %v1722_v54 = vshll.u32 %v2660_v45, 16  ;;  %v2047_v45 = vsel %vm3177_vm7, %v2699_v26, %v2046_v6 }
  0xbb   : > { %v2102_v3 = vunpack.c.l.b16 %v2047_v45 }
  0xbc   : > { %2464 = vmatmul.msk.bf16.gmra.mxu1 %vm435_vm3, %v2730_v0  ;;  %v1724_v0 = vrot.slane %v1722_v54, 5  ;;  %v1738_v54 = vrot.slane %v1736_v2, 5 }
  0xbd   : > { %v3423_v27 = vpop.f32.mrf.mxu0  ;;  %v3425_v38 = vpop.f32.mrf.mxu3 }
  0xbe   : > { %v1725_v22 = vsel %vm3069_vm4, %v1720_v60, %v1724_v0 }
  0xbf   : > { %v1897_v48 = vunpack.c.l.b16 %v1725_v22 }
  0xc1   : > { %v3432_v19 = vpop.f32.mrf.mxu1  ;;  %v1912_v0 = vpack.c.b16 %v1897_v48, %v1896_v47 }
  0xc2   : > { %2481 = vmatmul.msk.bf16.gmra.mxu2 %vm435_vm3, %v737_v40  ;;  %v1730_v40 = vshll.u32 %v2661_v46, 16 }
  0xc4   : > { %v1732_v20 = vrot.slane %v1730_v40, 5  ;;  %v3490_v40 = vld [vmem:[%s3041_s6 + $0x34] sm:$0xf] }
  0xc5   : > { %v3440_v8 = vpop.f32.mrf.mxu2 }
  0xc6   : > { %2540 = vmatmul.msk.bf16.gmra.mxu3 %vm435_vm3, %v2738_v49  ;;  %v2050_v49 = vsel %vm3177_vm7, %v2048_v23, %v2049_v24  ;;  %v1733_v46 = vor.u32 %v1732_v20, %v1729_v12  ;;  %v2692_v24 = vld [vmem:[%s3041_s6 + $0x24] sm:$0xe]  ;;  %v1366_v12 = vrot.slane %v3247_v62, 5  ;;  %v1760_v20 = vshll.u32 %v3490_v40, 16 }
  0xc7   : > { %v3445_v7 = vpop.f32.mrf.mxu0  ;;  %v2103_v6 = vunpack.c.l.b16 %v2050_v49 }
  0xc8   : > { %v1734_v31 = vrot.slane %v1733_v46, 4 }
  0xc9   : > { %v3451_v57 = vpop.f32.mrf.mxu3  ;;  %v589_v14 = vpop.f32.mrf.mxu1  ;;  %v2118_v28 = vpack.c.b16 %v2103_v6, %v2102_v3  ;;  %v2056_v3 = vrot.slane %v3475_v59, 5 }
  0xca   : > { %2573 = vmatmul.msk.bf16.gmra.mxu0 %vm435_vm3, %v1225_v16  ;;  %v590_v61 = vadd.f32 %v589_v14, %v3397_v52  ;;  %v1362_v52 = vrot.slane %v3232_v11, 5  ;;  %v1360_v16 = vsel %vm3177_vm7, %v2583_v39, %v1359_v30  ;;  %v1743_v14 = vor.u32 %v1742_v55, %v1738_v54  ;;  %v2664_v30 = vld [vmem:[%s3041_s6 + $0x30] sm:$0xf] }
  0xcb   : > { %v1410_v26 = vunpack.c.l.b16 %v1360_v16  ;;  %v1751_v47 = vshrl.u32 %v2664_v30, 16  ;;  %v1754_v48 = vshll.u32 %v2664_v30, 16  ;;  %v1369_v55 = vrot.slane %v3265_v34, 5 }
  0xcc   : > { %2591 = vmatmul.msk.bf16.vlgmr.msra.gmra.mxu1 %vm435_vm3, %v1424_v9  ;;  %v1363_v60 = vsel %vm3177_vm7, %v1361_v37, %v1362_v52  ;;  %v1744_v39 = vrot.slane %v1743_v14, 4  ;;  %v2053_v37 = vrot.slane %v3449_v10, 5  ;;  %v2576_v10 = vld [vmem:[%s3041_s6 + $0x24] sm:$0xe] }
  0xcd   : > { %v3464_v4 = vpop.f32.mrf.mxu2  ;;  %v1411_v22 = vunpack.c.l.b16 %v1363_v60  ;;  %v1739_v60 = vsel %vm3069_vm4, %v1734_v31, %v1738_v54  ;;  %v1753_v6 = vrot.slane %v1751_v47, 4  ;;  %v1756_v46 = vrot.slane %v1754_v48, 5 }
  0xce   : > { %v2055_v62 = vrot.slane %v2053_v37, 4  ;;  %v1762_v54 = vrot.slane %v1760_v20, 5  ;;  %v1898_v30 = vunpack.c.l.b16 %v1739_v60 }
  0xcf   : > { %v3472_v15 = vpop.f32.mrf.mxu0  ;;  %v1425_v52 = vpack.c.b16 %v1411_v22, %v1410_v26  ;;  %v1368_v26 = vrot.slane %v1366_v12, 4 }
  0xd0   : > { %v2057_v31 = vsel %vm3177_vm7, %v2055_v62, %v2056_v3  ;;  %v2693_v3 = vld [vmem:[%s3041_s6 + $0x30] sm:$0xe] }
  0xd1   : > { %v3477_v25 = vpop.f32.mrf.mxu3  ;;  %v591_v11 = vpop.f32.mrf.mxu1 }
  0xd2   : > { %2650 = vmatmul.msk.bf16.vlgmr.msra.gmra.mxu2 %vm435_vm3, %v2739_v32  ;;  %v592_v9 = vadd.f32 %v591_v11, %v3423_v27  ;;  %v1748_v27 = vrot.slane %v1746_v51, 5  ;;  %v2700_v32 = vrot.slane %v2692_v24, 9  ;;  %v2584_v51 = vrot.slane %v2576_v10, 9  ;;  %v2740_v24 = vld [vmem:[%s3041_s6 + $0x24] sm:$0xff] }
  0xd4   : > { %v2054_v34 = vsel %vm3177_vm7, %v2700_v32, %v2053_v37  ;;  %v1370_v32 = vsel %vm3177_vm7, %v1368_v26, %v1369_v55 }
  0xd5   : > { %v774_v23 = vpop.f32.mrf.mxu2 }
  0xd6   : > { %2683 = vmatmul.msk.bf16.vlgmr.msra.gmra.mxu3 %vm435_vm3, %v1912_v0  ;;  %v814_v56 = vadd.f32 %v774_v23, %v590_v61  ;;  %v1764_v61 = vshrl.u32 %v3490_v40, 16  ;;  %v1749_v0 = vsel %vm3069_vm4, %v1744_v39, %v1748_v27  ;;  %v2104_v39 = vunpack.c.l.b16 %v2054_v34 }
  0xd7   : > { %v1262_v2 = vpop.f32.mrf.mxu0  ;;  %v1757_v27 = vor.u32 %v1756_v46, %v1753_v6  ;;  %v2060_v46 = vrot.slane %v3490_v40, 5 }
  0xd8   : > { %v1766_v22 = vrot.slane %v1764_v61, 4 }
  0xd9   : > { %v928_v45 = vpop.f32.mrf.mxu3  ;;  %v594_v49 = vpop.f32.mrf.mxu1 }
  0xda   : > { %2708 = vmatmul.msk.bf16.vlgmr.msra.gmra.mxu0 %vm435_vm3, %v2118_v28  ;;  %v968_v11 = vadd.f32 %v928_v45, %v814_v56  ;;  %v595_v16 = vadd.f32 %v594_v49, %v3445_v7  ;;  %v1899_v28 = vunpack.c.l.b16 %v1749_v0  ;;  %v3512_v56 = vld [vmem:[%s3041_s6 + $0x38] sm:$0x1]  ;;  %v2105_v49 = vunpack.c.l.b16 %v2057_v31 }
  0xdb   : > { %v1770_v47 = vshll.u32 %v3512_v56, 16 }
  0xdc   : > { %2592 = vmatmul.msk.bf16.gmra.mxu1 %vm435_vm3, %v1425_v52  ;;  %v3508_v7 = vadd.f32 %v1262_v2, %v968_v11  ;;  %v1367_v52 = vsel %vm3177_vm7, %v2584_v51, %v1366_v12  ;;  %v1913_v45 = vpack.c.b16 %v1899_v28, %v1898_v30  ;;  %v1413_v11 = vunpack.c.l.b16 %v1370_v32  ;;  %v3530_v51 = vld [vmem:[%s3041_s6 + $0x40] sm:$0xf] }
  0xdd   : > { %v776_v14 = vpop.f32.mrf.mxu2  ;;  %v1412_v61 = vunpack.c.l.b16 %v1367_v52  ;;  %v1758_v12 = vrot.slane %v1757_v27, 4  ;;  %v1772_v0 = vrot.slane %v1770_v47, 5  ;;  %v2119_v55 = vpack.c.b16 %v2105_v49, %v2104_v39  ;;  %v2741_v49 = vld [vmem:[%s3041_s6 + $0x30] sm:$0xff] }
  0xde   : > { %v815_v23 = vadd.f32 %v776_v14, %v592_v9  ;;  %v1767_v9 = vor.u32 %v1766_v22, %v1762_v54  ;;  %v2667_v14 = vld [vmem:[%s3041_s6 + $0x3c] sm:$0xf]  ;;  %v1373_v30 = vrot.slane %v3273_v44, 5  ;;  %v2062_v27 = vrot.slane %v2060_v46, 4 }
  0xdf   : > { %v1264_v59 = vpop.f32.mrf.mxu0  ;;  %v1775_v31 = vshrl.u32 %v2667_v14, 16  ;;  %v1778_v39 = vshll.u32 %v2667_v14, 16  ;;  %v1376_v52 = vrot.slane %v3285_v63, 5 }
  0xe0   : > { %v1768_v60 = vrot.slane %v1767_v9, 4 }
  0xe1   : > { %v930_v37 = vpop.f32.mrf.mxu3  ;;  %v596_v2 = vpop.f32.mrf.mxu1 }
  0xe2   : > { %v969_v48 = vadd.f32 %v930_v37, %v815_v23  ;;  %2651 = vmatmul.msk.bf16.gmra.mxu2 %vm435_vm3, %v2740_v24  ;;  %v597_v20 = vadd.f32 %v596_v2, %v3472_v15  ;;  %v1426_v15 = vpack.c.b16 %v1413_v11, %v1412_v61  ;;  %v1763_v23 = vsel %vm3069_vm4, %v1758_v12, %v1762_v54 }
  0xe3   : > { %v1773_v24 = vsel %vm3069_vm4, %v1768_v60, %v1772_v0  ;;  %v2063_v37 = vrot.slane %v3512_v56, 5  ;;  %v1784_v54 = vshll.u32 %v3530_v51, 16  ;;  %v1788_v2 = vshrl.u32 %v3530_v51, 16  ;;  %v2669_v0 = vld [vmem:[%s3041_s6 + $0x44] sm:$0x1] }
  0xe4   : > { %v3525_v34 = vadd.f32 %v1264_v59, %v969_v48  ;;  %v2577_v59 = vld [vmem:[%s3041_s6 + $0x30] sm:$0xe]  ;;  %v1901_v9 = vunpack.c.l.b16 %v1773_v24  ;;  %v1375_v48 = vrot.slane %v1373_v30, 4  ;;  %v1777_v61 = vrot.slane %v1775_v31, 4  ;;  %v2694_v31 = vld [vmem:[%s3041_s6 + $0x3c] sm:$0xe] }
  0xe5   : > { %v779_v10 = vpop.f32.mrf.mxu2  ;;  %v2585_v47 = vrot.slane %v2577_v59, 9  ;;  %v1780_v11 = vrot.slane %v1778_v39, 5  ;;  %v2064_v63 = vsel %vm3177_vm7, %v2062_v27, %v2063_v37  ;;  %v1786_v12 = vrot.slane %v1784_v54, 5 }
  0xe6   : > { %2684 = vmatmul.msk.bf16.gmra.mxu3 %vm435_vm3, %v1913_v45  ;;  %v816_v62 = vadd.f32 %v779_v10, %v595_v16  ;;  %v2701_v16 = vrot.slane %v2693_v3, 9  ;;  %v1790_v60 = vrot.slane %v1788_v2, 4  ;;  %v1794_v24 = vshll.u32 %v2669_v0, 16  ;;  %v3564_v2 = vld [vmem:[%s3041_s6 + $0x4c] sm:$0xf] }
  0xe7   : > { %v1267_v6 = vpop.f32.mrf.mxu0 }
  0xe8   : > { %v2061_v56 = vsel %vm3177_vm7, %v2701_v16, %v2060_v46  ;;  %v1377_v46 = vsel %vm3177_vm7, %v1375_v48, %v1376_v52  ;;  %v2067_v16 = vrot.slane %v3530_v51, 5  ;;  %v2070_v48 = vrot.slane %v2669_v0, 5 }
  0xe9   : > { %v933_v26 = vpop.f32.mrf.mxu3  ;;  %v599_v22 = vpop.f32.mrf.mxu1  ;;  %v2106_v3 = vunpack.c.l.b16 %v2061_v56  ;;  %v1415_v59 = vunpack.c.l.b16 %v1377_v46 }
  0xea   : > { %2709 = vmatmul.msk.bf16.gmra.mxu0 %vm435_vm3, %v2119_v55  ;;  %v970_v28 = vadd.f32 %v933_v26, %v816_v62  ;;  %v600_v40 = vadd.f32 %v599_v22, %v3365_v5  ;;  %v1900_v5 = vunpack.c.l.b16 %v1763_v23  ;;  %v1781_v22 = vor.u32 %v1780_v11, %v1777_v61 }
  0xeb   : > { %v1791_v23 = vor.u32 %v1790_v60, %v1786_v12  ;;  %v2069_v51 = vrot.slane %v2067_v16, 4  ;;  %v1380_v11 = vrot.slane %v3293_v13, 5 }
  0xec   : > { %2593 = vmatmul.msk.bf16.gmra.mxu1 %vm435_vm3, %v1426_v15  ;;  %v3545_v44 = vadd.f32 %v1267_v6, %v970_v28  ;;  %v1914_v62 = vpack.c.b16 %v1901_v9, %v1900_v5  ;;  %v2107_v15 = vunpack.c.l.b16 %v2064_v63  ;;  %v1782_v54 = vrot.slane %v1781_v22, 4 }
  0xed   : > { %v781_v32 = vpop.f32.mrf.mxu2  ;;  %v1796_v5 = vrot.slane %v1794_v24, 5  ;;  %v2702_v9 = vrot.slane %v2694_v31, 9  ;;  %v1812_v63 = vshrl.u32 %v3564_v2, 16  ;;  %v2742_v24 = vld [vmem:[%s3041_s6 + $0x3c] sm:$0xff]  ;;  %v3590_v31 = vld [vmem:[%s3041_s6 + $0x50] sm:$0x1] }
  0xee   : > { %v817_v45 = vadd.f32 %v781_v32, %v597_v20  ;;  %v1374_v20 = vsel %vm3177_vm7, %v2585_v47, %v1373_v30  ;;  %v2670_v30 = vld [vmem:[%s3041_s6 + $0x48] sm:$0xf]  ;;  %v2120_v27 = vpack.c.b16 %v2107_v15, %v2106_v3  ;;  %v1792_v32 = vrot.slane %v1791_v23, 4 }
  0xef   : > { %v1269_v10 = vpop.f32.mrf.mxu0  ;;  %v1414_v28 = vunpack.c.l.b16 %v1374_v20  ;;  %v1787_v0 = vsel %vm3069_vm4, %v1782_v54, %v1786_v12  ;;  %v2068_v13 = vsel %vm3177_vm7, %v2702_v9, %v2067_v16  ;;  %v1382_v15 = vrot.slane %v1380_v11, 4 }
  0xf0   : > { %v1797_v3 = vsel %vm3069_vm4, %v1792_v32, %v1796_v5  ;;  %v1814_v22 = vrot.slane %v1812_v63, 4 }
  0xf1   : > { %v935_v55 = vpop.f32.mrf.mxu3  ;;  %v601_v6 = vpop.f32.mrf.mxu1  ;;  %v1427_v47 = vpack.c.b16 %v1415_v59, %v1414_v28  ;;  %v1902_v28 = vunpack.c.l.b16 %v1787_v0  ;;  %v1903_v16 = vunpack.c.l.b16 %v1797_v3  ;;  %v2074_v0 = vrot.slane %v3564_v2, 5 }
  0xf2   : > { %v971_v14 = vadd.f32 %v935_v55, %v817_v45  ;;  %2652 = vmatmul.msk.bf16.gmra.mxu2 %vm435_vm3, %v2741_v49  ;;  %v602_v26 = vadd.f32 %v601_v6, %v3384_v29  ;;  %v1799_v45 = vshrl.u32 %v2670_v30, 16  ;;  %v1802_v49 = vshll.u32 %v2670_v30, 16  ;;  %v2578_v55 = vld [vmem:[%s3041_s6 + $0x3c] sm:$0xe] }
  0xf3   : > { %v2071_v6 = vsel %vm3177_vm7, %v2069_v51, %v2070_v48  ;;  %v1915_v9 = vpack.c.b16 %v1903_v16, %v1902_v28  ;;  %v2076_v28 = vrot.slane %v2074_v0, 4  ;;  %v2077_v16 = vrot.slane %v3590_v31, 5 }
  0xf4   : > { %v3566_v52 = vadd.f32 %v1269_v10, %v971_v14  ;;  %v1804_v20 = vrot.slane %v1802_v49, 5  ;;  %v2586_v14 = vrot.slane %v2578_v55, 9  ;;  %v2109_v30 = vunpack.c.l.b16 %v2071_v6  ;;  %v2673_v49 = vld [vmem:[%s3041_s6 + $0x54] sm:$0xf] }
  0xf5   : > { %v784_v39 = vpop.f32.mrf.mxu2  ;;  %v1826_v6 = vshll.u32 %v2673_v49, 16 }
  0xf6   : > { %2685 = vmatmul.msk.bf16.gmra.mxu3 %vm435_vm3, %v1914_v62  ;;  %v818_v37 = vadd.f32 %v784_v39, %v600_v40  ;;  %v1808_v40 = vshll.u32 %v3564_v2, 16  ;;  %v1383_v62 = vrot.slane %v3308_v43, 5  ;;  %v2108_v39 = vunpack.c.l.b16 %v2068_v13 }
  0xf7   : > { %v1272_v29 = vpop.f32.mrf.mxu0  ;;  %v1381_v54 = vsel %vm3177_vm7, %v2586_v14, %v1380_v11  ;;  %v1823_v13 = vshrl.u32 %v2673_v49, 16  ;;  %v1387_v2 = vrot.slane %v3321_v58, 5  ;;  %v1390_v58 = vrot.slane %v3335_v18, 5 }
  0xf8   : > { %v3586_v12 = vrot.slane %v1808_v40, 5  ;;  %v1416_v48 = vunpack.c.l.b16 %v1381_v54  ;;  %v2078_v49 = vsel %vm3177_vm7, %v2076_v28, %v2077_v16  ;;  %v2676_v28 = vld [vmem:[%s3041_s6 + $0x60] sm:$0xf] }
  0xf9   : > { %v938_v56 = vpop.f32.mrf.mxu3  ;;  %v604_v61 = vpop.f32.mrf.mxu1 }
  0xfa   : > { %2710 = vmatmul.msk.bf16.gmra.mxu0 %vm435_vm3, %v2120_v27  ;;  %v972_v10 = vadd.f32 %v938_v56, %v818_v37  ;;  %v605_v60 = vadd.f32 %v604_v61, %v3412_v35  ;;  %v1801_v35 = vrot.slane %v1799_v45, 4  ;;  %v3602_v56 = vld [vmem:[%s3041_s6 + $0x58] sm:$0xf]  ;;  %v2121_v61 = vpack.c.b16 %v2109_v30, %v2108_v39 }
  0xfb   : > { %v1825_v39 = vrot.slane %v1823_v13, 4  ;;  %v1828_v30 = vrot.slane %v1826_v6, 5 }
  0xfc   : > { %2594 = vmatmul.msk.bf16.gmra.mxu1 %vm435_vm3, %v1427_v47  ;;  %v3584_v46 = vadd.f32 %v1272_v29, %v972_v10  ;;  %v1384_v29 = vsel %vm3177_vm7, %v1382_v15, %v1383_v62  ;;  %v1805_v32 = vor.u32 %v1804_v20, %v1801_v35  ;;  %v1818_v47 = vshll.u32 %v3590_v31, 16  ;;  %v2695_v62 = vld [vmem:[%s3041_s6 + $0x48] sm:$0xe] }
  0xfd   : > { %v786_v43 = vpop.f32.mrf.mxu2  ;;  %v1417_v45 = vunpack.c.l.b16 %v1384_v29  ;;  %v1832_v35 = vshll.u32 %v3602_v56, 16  ;;  %v1836_v20 = vshrl.u32 %v3602_v56, 16 }
  0xfe   : > { %v819_v23 = vadd.f32 %v786_v43, %v602_v26  ;;  %v1815_v26 = vor.u32 %v1814_v22, %v3586_v12  ;;  %v1806_v40 = vrot.slane %v1805_v32, 4  ;;  %v1820_v55 = vrot.slane %v1818_v47, 5 }
  0xff   : > { %v1274_v59 = vpop.f32.mrf.mxu0  ;;  %v1428_v43 = vpack.c.b16 %v1417_v45, %v1416_v48  ;;  %v2703_v22 = vrot.slane %v2695_v62, 9  ;;  %v1389_v32 = vrot.slane %v1387_v2, 4 }
 0x100   : > { %v1816_v63 = vrot.slane %v1815_v26, 4  ;;  %v3625_v26 = vld [vmem:[%s3041_s6 + $0x5c] sm:$0x1] }
 0x101   : > { %v940_v27 = vpop.f32.mrf.mxu3  ;;  %v606_v37 = vpop.f32.mrf.mxu1  ;;  %v2075_v45 = vsel %vm3177_vm7, %v2703_v22, %v2074_v0  ;;  %v1842_v18 = vshll.u32 %v3625_v26, 16  ;;  %v2696_v22 = vld [vmem:[%s3041_s6 + $0x54] sm:$0xe] }
 0x102   : > { %v973_v5 = vadd.f32 %v940_v27, %v819_v23  ;;  %2653 = vmatmul.msk.bf16.gmra.mxu2 %vm435_vm3, %v2742_v24  ;;  %v607_v51 = vadd.f32 %v606_v37, %v3432_v19  ;;  %v1821_v24 = vsel %vm3069_vm4, %v1816_v63, %v1820_v55  ;;  %v1834_v27 = vrot.slane %v1832_v35, 5 }
 0x103   : > { %v1838_v37 = vrot.slane %v1836_v20, 4  ;;  %v1905_v31 = vunpack.c.l.b16 %v1821_v24  ;;  %v2110_v0 = vunpack.c.l.b16 %v2075_v45  ;;  %v1397_v45 = vrot.slane %v3362_v1, 5 }
 0x104   : > { %v3607_v3 = vadd.f32 %v1274_v59, %v973_v5  ;;  %v2579_v59 = vld [vmem:[%s3041_s6 + $0x48] sm:$0xe] }
 0x105   : > { %v789_v11 = vpop.f32.mrf.mxu2  ;;  %v2587_v29 = vrot.slane %v2579_v59, 9 }
 0x106   : > { %2686 = vmatmul.msk.bf16.gmra.mxu3 %vm435_vm3, %v1915_v9  ;;  %v820_v10 = vadd.f32 %v789_v11, %v605_v60  ;;  %v1811_v60 = vsel %vm3069_vm4, %v1806_v40, %v3586_v12  ;;  %v2743_v9 = vld [vmem:[%s3041_s6 + $0x48] sm:$0xff]  ;;  %v1839_v11 = vor.u32 %v1838_v37, %v1834_v27  ;;  %v2704_v37 = vrot.slane %v2696_v22, 9 }
 0x107   : > { %v1277_v19 = vpop.f32.mrf.mxu0  ;;  %v1904_v47 = vunpack.c.l.b16 %v1811_v60 }
 0x108   : > { %v1840_v6 = vrot.slane %v1839_v11, 4 }
 0x109   : > { %v943_v14 = vpop.f32.mrf.mxu3  ;;  %v609_v15 = vpop.f32.mrf.mxu1  ;;  %v1916_v62 = vpack.c.b16 %v1905_v31, %v1904_v47  ;;  %v2084_v47 = vrot.slane %v3625_v26, 5  ;;  %v2580_v31 = vld [vmem:[%s3041_s6 + $0x54] sm:$0xe] }
 0x10a   : > { %2711 = vmatmul.msk.bf16.gmra.mxu0 %vm435_vm3, %v2121_v61  ;;  %v974_v23 = vadd.f32 %v943_v14, %v820_v10  ;;  %v1829_v61 = vor.u32 %v1828_v30, %v1825_v39  ;;  %v1391_v10 = vsel %vm3177_vm7, %v1389_v32, %v1390_v58  ;;  %v610_v35 = vadd.f32 %v609_v15, %v3389_v41  ;;  %v3646_v39 = vld [vmem:[%s3041_s6 + $0x64] sm:$0xf] }
 0x10b   : > { %v1844_v14 = vrot.slane %v1842_v18, 5  ;;  %v1847_v32 = vshrl.u32 %v2676_v28, 16 }
 0x10c   : > { %2595 = vmatmul.msk.bf16.gmra.mxu1 %vm435_vm3, %v1428_v43  ;;  %v3621_v12 = vadd.f32 %v1277_v19, %v974_v23  ;;  %v2111_v19 = vunpack.c.l.b16 %v2078_v49  ;;  %v1830_v13 = vrot.slane %v1829_v61, 4  ;;  %v1419_v43 = vunpack.c.l.b16 %v1391_v10 }
 0x10d   : > { %v791_v54 = vpop.f32.mrf.mxu2  ;;  %v1845_v15 = vsel %vm3069_vm4, %v1840_v6, %v1844_v14  ;;  %v1849_v10 = vrot.slane %v1847_v32, 4 }
 0x10e   : > { %v821_v5 = vadd.f32 %v791_v54, %v607_v51  ;;  %v1388_v51 = vsel %vm3177_vm7, %v2587_v29, %v1387_v2  ;;  %v2081_v2 = vrot.slane %v3602_v56, 5  ;;  %v2122_v23 = vpack.c.b16 %v2111_v19, %v2110_v0  ;;  %v2744_v0 = vld [vmem:[%s3041_s6 + $0x54] sm:$0xff] }
 0x10f   : > { %v1279_v48 = vpop.f32.mrf.mxu0  ;;  %v1418_v20 = vunpack.c.l.b16 %v1388_v51  ;;  %v1835_v41 = vsel %vm3069_vm4, %v1830_v13, %v1834_v27  ;;  %v1394_v29 = vrot.slane %v3347_v42, 5  ;;  %v1856_v27 = vshll.u32 %v3646_v39, 16  ;;  %v2678_v13 = vld [vmem:[%s3041_s6 + $0x68] sm:$0x1] }
 0x110   : > { %v2083_v54 = vrot.slane %v2081_v2, 4  ;;  %v1906_v49 = vunpack.c.l.b16 %v1835_v41  ;;  %v1907_v42 = vunpack.c.l.b16 %v1845_v15  ;;  %v2082_v11 = vsel %vm3177_vm7, %v2704_v37, %v2081_v2 }
 0x111   : > { %v945_v40 = vpop.f32.mrf.mxu3  ;;  %v611_v63 = vpop.f32.mrf.mxu1  ;;  %v1429_v30 = vpack.c.b16 %v1419_v43, %v1418_v20  ;;  %v1396_v51 = vrot.slane %v1394_v29, 4  ;;  %v2112_v6 = vunpack.c.l.b16 %v2082_v11 }
 0x112   : > { %v975_v55 = vadd.f32 %v945_v40, %v821_v5  ;;  %2654 = vmatmul.msk.bf16.gmra.mxu2 %vm435_vm3, %v2743_v9  ;;  %v1850_v5 = vshll.u32 %v2676_v28, 16  ;;  %v612_v61 = vadd.f32 %v611_v63, %v3419_v17  ;;  %v2588_v40 = vrot.slane %v2580_v31, 9 }
 0x113   : > { %v2085_v1 = vsel %vm3177_vm7, %v2083_v54, %v2084_v47  ;;  %v1858_v17 = vrot.slane %v1856_v27, 5  ;;  %v1866_v28 = vshll.u32 %v2678_v13, 16  ;;  %v2088_v31 = vrot.slane %v3646_v39, 5  ;;  %v2679_v27 = vld [vmem:[%s3041_s6 + $0x6c] sm:$0xf] }
 0x114   : > { %v3643_v16 = vadd.f32 %v1279_v48, %v975_v55  ;;  %v1860_v48 = vshrl.u32 %v3646_v39, 16  ;;  %v1852_v55 = vrot.slane %v1850_v5, 5  ;;  %v2113_v20 = vunpack.c.l.b16 %v2085_v1  ;;  %v2697_v5 = vld [vmem:[%s3041_s6 + $0x60] sm:$0xe] }
 0x115   : > { %v794_v60 = vpop.f32.mrf.mxu2  ;;  %v1395_v14 = vsel %vm3177_vm7, %v2588_v40, %v1394_v29  ;;  %v1868_v32 = vrot.slane %v1866_v28, 5  ;;  %v2581_v40 = vld [vmem:[%s3041_s6 + $0x60] sm:$0xe]  ;;  %v1871_v39 = vshrl.u32 %v2679_v27, 16  ;;  %v1404_v1 = vrot.slane %v3395_v50, 5 }
 0x116   : > { %2687 = vmatmul.msk.bf16.gmra.mxu3 %vm435_vm3, %v1916_v62  ;;  %v822_v24 = vadd.f32 %v794_v60, %v610_v35  ;;  %v1862_v63 = vrot.slane %v1860_v48, 4  ;;  %v1398_v60 = vsel %vm3177_vm7, %v1396_v51, %v1397_v45  ;;  %v1853_v22 = vor.u32 %v1852_v55, %v1849_v10 }
 0x117   : > { %v1282_v59 = vpop.f32.mrf.mxu0  ;;  %v1421_v41 = vunpack.c.l.b16 %v1398_v60  ;;  %v2123_v15 = vpack.c.b16 %v2113_v20, %v2112_v6  ;;  %v1874_v51 = vshll.u32 %v2679_v27, 16  ;;  %v2090_v10 = vrot.slane %v2088_v31, 4 }
 0x118   : > { %v2091_v55 = vrot.slane %v2678_v13, 5  ;;  %v2745_v13 = vld [vmem:[%s3041_s6 + $0x60] sm:$0xff] }
 0x119   : > { %v948_v56 = vpop.f32.mrf.mxu3  ;;  %v614_v58 = vpop.f32.mrf.mxu1 }
 0x11a   : > { %2712 = vmatmul.msk.bf16.gmra.mxu0 %vm435_vm3, %v2122_v23  ;;  %v976_v9 = vadd.f32 %v948_v56, %v822_v24  ;;  %v1917_v23 = vpack.c.b16 %v1907_v42, %v1906_v49  ;;  %v1863_v24 = vor.u32 %v1862_v63, %v1858_v17  ;;  %v1854_v56 = vrot.slane %v1853_v22, 4 }
 0x11b   : > { %v1401_v42 = vrot.slane %v3376_v21, 5  ;;  %v1873_v22 = vrot.slane %v1871_v39, 4 }
 0x11c   : > { %2596 = vmatmul.msk.bf16.gmra.mxu1 %vm435_vm3, %v1429_v30  ;;  %v3663_v18 = vadd.f32 %v1282_v59, %v976_v9  ;;  %v615_v59 = vadd.f32 %v614_v58, %v3440_v8  ;;  %v1420_v30 = vunpack.c.l.b16 %v1395_v14  ;;  %v1864_v29 = vrot.slane %v1863_v24, 4  ;;  %v3682_v58 = vld [vmem:[%s3041_s6 + $0x70] sm:$0xf]  ;;  %v2681_v24 = vld [vmem:[%s3041_s6 + $0x74] sm:$0x1] }
 0x11d   : > { %v796_v26 = vpop.f32.mrf.mxu2  ;;  %v1859_v49 = vsel %vm3069_vm4, %v1854_v56, %v1858_v17  ;;  %v1403_v20 = vrot.slane %v1401_v42, 4  ;;  %v2095_v39 = vrot.slane %v3682_v58, 5 }
 0x11e   : > { %v823_v62 = vadd.f32 %v796_v26, %v612_v61  ;;  %v1430_v8 = vpack.c.b16 %v1421_v41, %v1420_v30  ;;  %v2705_v61 = vrot.slane %v2697_v5, 9  ;;  %v1869_v26 = vsel %vm3069_vm4, %v1864_v29, %v1868_v32 }
 0x11f   : > { %v1284_v19 = vpop.f32.mrf.mxu0  ;;  %v1909_v6 = vunpack.c.l.b16 %v1869_v26  ;;  %v1890_v5 = vshll.u32 %v2681_v24, 16 }
 0x120   : > { %v2089_v60 = vsel %vm3177_vm7, %v2705_v61, %v2088_v31 }
 0x121   : > { %v950_v35 = vpop.f32.mrf.mxu3  ;;  %v616_v43 = vpop.f32.mrf.mxu1 }
 0x122   : > { %v977_v2 = vadd.f32 %v950_v35, %v823_v62  ;;  %2655 = vmatmul.msk.bf16.gmra.mxu2 %vm435_vm3, %v2744_v0  ;;  %v1880_v62 = vshll.u32 %v3682_v58, 16  ;;  %v1884_v0 = vshrl.u32 %v3682_v58, 16  ;;  %v617_v21 = vadd.f32 %v616_v43, %v3464_v4 }
 0x123   : > { %v2589_v35 = vrot.slane %v2581_v40, 9  ;;  %v2092_v4 = vsel %vm3177_vm7, %v2090_v10, %v2091_v55  ;;  %v1892_v40 = vrot.slane %v1890_v5, 5  ;;  %v2698_v10 = vld [vmem:[%s3041_s6 + $0x6c] sm:$0xe] }
 0x124   : > { %v3677_v9 = vadd.f32 %v1284_v19, %v977_v2  ;;  %v1908_v19 = vunpack.c.l.b16 %v1859_v49  ;;  %v1876_v2 = vrot.slane %v1874_v51, 5  ;;  %v1882_v43 = vrot.slane %v1880_v62, 5 }
 0x125   : > { %v799_v37 = vpop.f32.mrf.mxu2  ;;  %v1402_v41 = vsel %vm3177_vm7, %v2589_v35, %v1401_v42 }
 0x126   : > { %2688 = vmatmul.msk.bf16.gmra.mxu3 %vm435_vm3, %v1917_v23  ;;  %v824_v54 = vadd.f32 %v799_v37, %v615_v59  ;;  %v1886_v23 = vrot.slane %v1884_v0, 4  ;;  %v2114_v59 = vunpack.c.l.b16 %v2089_v60  ;;  %v1918_v56 = vpack.c.b16 %v1909_v6, %v1908_v19 }
 0x127   : > { %v1287_v47 = vpop.f32.mrf.mxu0  ;;  %v1877_v29 = vor.u32 %v1876_v2, %v1873_v22  ;;  %v1422_v31 = vunpack.c.l.b16 %v1402_v41 }
 0x128   : > { %v1887_v32 = vor.u32 %v1886_v23, %v1882_v43 }
 0x129   : > { %v953_v48 = vpop.f32.mrf.mxu3  ;;  %v619_v45 = vpop.f32.mrf.mxu1  ;;  %v1878_v42 = vrot.slane %v1877_v29, 4 }
 0x12a   : > { %2713 = vmatmul.msk.bf16.gmra.mxu0 %vm435_vm3, %v2123_v15  ;;  %v978_v11 = vadd.f32 %v953_v48, %v824_v54  ;;  %v1405_v15 = vsel %vm3177_vm7, %v1403_v20, %v1404_v1  ;;  %v2115_v54 = vunpack.c.l.b16 %v2092_v4  ;;  %v1888_v26 = vrot.slane %v1887_v32, 4  ;;  %v2746_v20 = vld [vmem:[%s3041_s6 + $0x6c] sm:$0xff]  ;;  %s2411_s6 = sshll.u32 %s175_s27, 7 }
 0x12b   : > { %v1423_v27 = vunpack.c.l.b16 %v1405_v15  ;;  %v1883_v62 = vsel %vm3069_vm4, %v1878_v42, %v1882_v43  ;;  %v2706_v1 = vrot.slane %v2698_v10, 9  ;;  %v3750_v10 = vld [vmem:[%s3867_s2 + $0x1] ss:$0 sm:$0xff]  ;;  %s3757_s7 = scalar_lea.vmem [#allocation2], %s2411_s6 }
 0x12c   : > { %2597 = vmatmul.msk.bf16.gmra.mxu1 %vm435_vm3, %v1430_v8  ;;  %v3696_v17 = vadd.f32 %v1287_v47, %v978_v11  ;;  %v620_v47 = vadd.f32 %v619_v45, %v3399_v53  ;;  %v2124_v49 = vpack.c.b16 %v2115_v54, %v2114_v59  ;;  %v1893_v0 = vsel %vm3069_vm4, %v1888_v26, %v1892_v40  ;;  %s2317_s21 = sshll.u32 %s3757_s7, 4  ;;  %s2318_s21 = int_to_ptr.vmem [resolvable:$true] %s2317_s21 }
 0x12d   : > { %v801_v63 = vpop.f32.mrf.mxu2  ;;  %v1431_v51 = vpack.c.b16 %v1423_v27, %v1422_v31  ;;  %v2096_v22 = vsel %vm3177_vm7, %v2706_v1, %v2095_v39 }
 0x12e   : > { %v825_v14 = vadd.f32 %v801_v63, %v617_v21  ;;  %v2097_v21 = vrot.slane %v2095_v39, 4  ;;  %v2098_v63 = vrot.slane %v2681_v24, 5  ;;  %v2116_v43 = vunpack.c.l.b16 %v2096_v22  ;;  %v3745_v39 = vld [vmem:[%s3867_s2] ss:$0 sm:$0xff] }
 0x12f   : > { %v1289_v50 = vpop.f32.mrf.mxu0 }
 0x130   : > { %v2099_v36 = vsel %vm3177_vm7, %v2097_v21, %v2098_v63 }
 0x131   : > { %v955_v28 = vpop.f32.mrf.mxu3  ;;  %v621_v30 = vpop.f32.mrf.mxu1  ;;  %v2117_v23 = vunpack.c.l.b16 %v2099_v36 }
 0x132   : > { %v979_v37 = vadd.f32 %v955_v28, %v825_v14  ;;  %2656 = vmatmul.msk.bf16.gmra.mxu2 %vm435_vm3, %v2745_v13  ;;  %v622_v19 = vadd.f32 %v621_v30, %v3425_v38  ;;  %v1910_v14 = vunpack.c.l.b16 %v1883_v62  ;;  %v1911_v13 = vunpack.c.l.b16 %v1893_v0 }
 0x133   : > { %v2125_v30 = vpack.c.b16 %v2117_v23, %v2116_v43 }
 0x134   : > { %v3710_v8 = vadd.f32 %v1289_v50, %v979_v37  ;;  %v1919_v38 = vpack.c.b16 %v1911_v13, %v1910_v14 }
 0x135   : > { %v804_v48 = vpop.f32.mrf.mxu2 }
 0x136   : > { %2689 = vmatmul.msk.bf16.gmra.mxu3 %vm435_vm3, %v1918_v56  ;;  %v826_v61 = vadd.f32 %v804_v48, %v620_v47 }
 0x137   : > { %v1292_v11 = vpop.f32.mrf.mxu0 }
 0x139   : > { %v958_v55 = vpop.f32.mrf.mxu3  ;;  %v624_v53 = vpop.f32.mrf.mxu1 }
 0x13a   : > { %2714 = vmatmul.msk.bf16.gmra.mxu0 %vm435_vm3, %v2124_v49  ;;  %v980_v45 = vadd.f32 %v958_v55, %v826_v61  ;;  %v625_v24 = vadd.f32 %v624_v53, %v3451_v57 }
 0x13c   : > { %2598 = vmatmul.msk.bf16.gmra.mxu1 %vm435_vm3, %v1431_v51  ;;  %v3722_v58 = vadd.f32 %v1292_v11, %v980_v45 }
 0x13d   : > { %v806_v6 = vpop.f32.mrf.mxu2 }
 0x13e   : > { %v827_v35 = vadd.f32 %v806_v6, %v622_v19 }
 0x13f   : > { %v1294_v60 = vpop.f32.mrf.mxu0 }
 0x141   : > { %v960_v2 = vpop.f32.mrf.mxu3  ;;  %v626_v50 = vpop.f32.mrf.mxu1 }
 0x142   : > { %v981_v4 = vadd.f32 %v960_v2, %v827_v35  ;;  %2657 = vmatmul.msk.bf16.gmra.mxu2 %vm435_vm3, %v2746_v20  ;;  %v627_v54 = vadd.f32 %v626_v50, %v3477_v25 }
 0x144   : > { %v3731_v28 = vadd.f32 %v1294_v60, %v981_v4 }
 0x145   : > { %v809_v59 = vpop.f32.mrf.mxu2 }
 0x146   : > { %2690 = vmatmul.msk.bf16.gmra.mxu3 %vm435_vm3, %v1919_v38  ;;  %v828_v41 = vadd.f32 %v809_v59, %v625_v24 }
 0x147   : > { %v1297_v15 = vpop.f32.mrf.mxu0 }
 0x149   : > { %v963_v33 = vpop.f32.mrf.mxu3  ;;  %v1468_v37 = vpop.f32.mrf.mxu1 }
 0x14a   : > { %2715 = vmatmul.msk.bf16.gmra.mxu0 %vm435_vm3, %v2125_v30  ;;  %v982_v56 = vadd.f32 %v963_v33, %v828_v41  ;;  %v1508_v48 = vadd.f32 %v1468_v37, %v3508_v7 }
 0x14c   : > { %v3736_v29 = vadd.f32 %v1297_v15, %v982_v56 }
 0x14d   : > { %v811_v32 = vpop.f32.mrf.mxu2 }
 0x14e   : > { %v829_v57 = vadd.f32 %v811_v32, %v627_v54 }
 0x14f   : > { %v1299_v5 = vpop.f32.mrf.mxu0 }
 0x151   : > { %v965_v47 = vpop.f32.mrf.mxu3  ;;  %v1470_v31 = vpop.f32.mrf.mxu1 }
 0x152   : > { %v983_v27 = vadd.f32 %v965_v47, %v829_v57  ;;  %v1509_v7 = vadd.f32 %v1470_v31, %v3525_v34 }
 0x154   : > { %v3739_v49 = vadd.f32 %v1299_v5, %v983_v27 }
 0x155   : > { %v1622_v61 = vpop.f32.mrf.mxu2 }
 0x156   : > { %v1662_v42 = vadd.f32 %v1622_v61, %v1508_v48 }
 0x157   : > { %v2162_v11 = vpop.f32.mrf.mxu0 }
 0x159   : > { %v1956_v26 = vpop.f32.mrf.mxu3  ;;  %v1473_v40 = vpop.f32.mrf.mxu1 }
 0x15a   : > { %v1996_v25 = vadd.f32 %v1956_v26, %v1662_v42  ;;  %v1510_v6 = vadd.f32 %v1473_v40, %v3545_v44 }
 0x15c   : > { %v2202_v51 = vadd.f32 %v2162_v11, %v1996_v25 }
 0x15d   : > { %v1624_v55 = vpop.f32.mrf.mxu2 }
 0x15e   : > { %v2220_v53 = vadd.f32 %v3745_v39, %v2202_v51  ;;  %v1663_v45 = vadd.f32 %v1624_v55, %v1509_v7 }
 0x15f   : > { %v2164_v62 = vpop.f32.mrf.mxu0 }
 0x160   : > { %vm2237_vm8 = vcmp.gt.f32.partialorder %v2220_v53, 0.0  ;;  %v2254_v0 = vmul.f32 %v3750_v10, %v2220_v53 }
 0x161   : > { %v1958_v1 = vpop.f32.mrf.mxu3  ;;  %v1475_v21 = vpop.f32.mrf.mxu1 }
 0x162   : > { %v2270_v63 = vsel %vm2237_vm8, %v2220_v53, %v2254_v0  ;;  %v1997_v19 = vadd.f32 %v1958_v1, %v1663_v45  ;;  %v1511_v38 = vadd.f32 %v1475_v21, %v3566_v52 }
 0x163   : > { %2286 = vst [vmem:[%s3757_s7] sm:$0xff] %v2270_v63 }
 0x164   : > { %v2203_v34 = vadd.f32 %v2164_v62, %v1997_v19 }
 0x165   : > { %v1627_v35 = vpop.f32.mrf.mxu2 }
 0x166   : > { %v2221_v20 = vadd.f32 %v3745_v39, %v2203_v34  ;;  %v1664_v14 = vadd.f32 %v1627_v35, %v1510_v6 }
 0x167   : > { %v2167_v13 = vpop.f32.mrf.mxu0 }
 0x168   : > { %vm2238_vm9 = vcmp.gt.f32.partialorder %v2221_v20, 0.0  ;;  %v2255_v60 = vmul.f32 %v3750_v10, %v2221_v20 }
 0x169   : > { %v1961_v22 = vpop.f32.mrf.mxu3  ;;  %v1478_v36 = vpop.f32.mrf.mxu1 }
 0x16a   : > { %v2271_v2 = vsel %vm2238_vm9, %v2221_v20, %v2255_v60  ;;  %v1998_v50 = vadd.f32 %v1961_v22, %v1664_v14  ;;  %v1512_v56 = vadd.f32 %v1478_v36, %v3584_v46 }
 0x16b   : > { %2287 = vst [vmem:[%s3757_s7 + $0x8] sm:$0xff] %v2271_v2 }
 0x16c   : > { %v2204_v4 = vadd.f32 %v2167_v13, %v1998_v50 }
 0x16d   : > { %v1629_v43 = vpop.f32.mrf.mxu2 }
 0x16e   : > { %v2222_v44 = vadd.f32 %v3745_v39, %v2204_v4  ;;  %v1665_v23 = vadd.f32 %v1629_v43, %v1511_v38 }
 0x16f   : > { %v2169_v24 = vpop.f32.mrf.mxu0 }
 0x170   : > { %vm2239_vm10 = vcmp.gt.f32.partialorder %v2222_v44, 0.0  ;;  %v2256_v59 = vmul.f32 %v3750_v10, %v2222_v44 }
 0x171   : > { %v1963_v30 = vpop.f32.mrf.mxu3  ;;  %v1480_v41 = vpop.f32.mrf.mxu1 }
 0x172   : > { %v2272_v15 = vsel %vm2239_vm10, %v2222_v44, %v2256_v59  ;;  %v1999_v33 = vadd.f32 %v1963_v30, %v1665_v23  ;;  %v1513_v42 = vadd.f32 %v1480_v41, %v3607_v3 }
 0x173   : > { %2288 = vst [vmem:[%s3757_s7 + $0x10] sm:$0xff] %v2272_v15 }
 0x174   : > { %v2205_v37 = vadd.f32 %v2169_v24, %v1999_v33 }
 0x175   : > { %v1632_v54 = vpop.f32.mrf.mxu2 }
 0x176   : > { %v2223_v52 = vadd.f32 %v3745_v39, %v2205_v37  ;;  %v1666_v32 = vadd.f32 %v1632_v54, %v1512_v56 }
 0x177   : > { %v2172_v57 = vpop.f32.mrf.mxu0 }
 0x178   : > { %vm2240_vm11 = vcmp.gt.f32.partialorder %v2223_v52, 0.0  ;;  %v2257_v5 = vmul.f32 %v3750_v10, %v2223_v52 }
 0x179   : > { %v1966_v47 = vpop.f32.mrf.mxu3  ;;  %v1483_v31 = vpop.f32.mrf.mxu1 }
 0x17a   : > { %v2273_v27 = vsel %vm2240_vm11, %v2223_v52, %v2257_v5  ;;  %v2000_v48 = vadd.f32 %v1966_v47, %v1666_v32  ;;  %v1514_v62 = vadd.f32 %v1483_v31, %v3621_v12 }
 0x17b   : > { %2289 = vst [vmem:[%s3757_s7 + $0x18] sm:$0xff] %v2273_v27 }
 0x17c   : > { %v2206_v61 = vadd.f32 %v2172_v57, %v2000_v48 }
 0x17d   : > { %v1634_v11 = vpop.f32.mrf.mxu2 }
 0x17e   : > { %v2224_v46 = vadd.f32 %v3745_v39, %v2206_v61  ;;  %v1667_v26 = vadd.f32 %v1634_v11, %v1513_v42 }
 0x17f   : > { %v2174_v40 = vpop.f32.mrf.mxu0 }
 0x180   : > { %vm2241_vm12 = vcmp.gt.f32.partialorder %v2224_v46, 0.0  ;;  %v2258_v25 = vmul.f32 %v3750_v10, %v2224_v46 }
 0x181   : > { %v1968_v51 = vpop.f32.mrf.mxu3  ;;  %v1485_v7 = vpop.f32.mrf.mxu1 }
 0x182   : > { %v2274_v55 = vsel %vm2241_vm12, %v2224_v46, %v2258_v25  ;;  %v2001_v53 = vadd.f32 %v1968_v51, %v1667_v26  ;;  %v1515_v14 = vadd.f32 %v1485_v7, %v3643_v16 }
 0x183   : > { %2290 = vst [vmem:[%s3757_s7 + $0x20] sm:$0xff] %v2274_v55 }
 0x184   : > { %v2207_v45 = vadd.f32 %v2174_v40, %v2001_v53 }
 0x185   : > { %v1637_v0 = vpop.f32.mrf.mxu2 }
 0x186   : > { %v2225_v3 = vadd.f32 %v3745_v39, %v2207_v45  ;;  %v1668_v1 = vadd.f32 %v1637_v0, %v1514_v62 }
 0x187   : > { %v2177_v21 = vpop.f32.mrf.mxu0 }
 0x188   : > { %vm2242_vm13 = vcmp.gt.f32.partialorder %v2225_v3, 0.0  ;;  %v2259_v63 = vmul.f32 %v3750_v10, %v2225_v3 }
 0x189   : > { %v1971_v19 = vpop.f32.mrf.mxu3  ;;  %v1488_v34 = vpop.f32.mrf.mxu1 }
 0x18a   : > { %v2275_v6 = vsel %vm2242_vm13, %v2225_v3, %v2259_v63  ;;  %v2002_v35 = vadd.f32 %v1971_v19, %v1668_v1  ;;  %v1516_v44 = vadd.f32 %v1488_v34, %v3663_v18 }
 0x18b   : > { %2291 = vst [vmem:[%s3757_s7 + $0x28] sm:$0xff] %v2275_v6 }
 0x18c   : > { %v2208_v20 = vadd.f32 %v2177_v21, %v2002_v35 }
 0x18d   : > { %v1639_v13 = vpop.f32.mrf.mxu2 }
 0x18e   : > { %v2226_v12 = vadd.f32 %v3745_v39, %v2208_v20  ;;  %v1669_v60 = vadd.f32 %v1639_v13, %v1515_v14 }
 0x18f   : > { %v2179_v22 = vpop.f32.mrf.mxu0 }
 0x190   : > { %vm2243_vm14 = vcmp.gt.f32.partialorder %v2226_v12, 0.0  ;;  %v2260_v36 = vmul.f32 %v3750_v10, %v2226_v12 }
 0x191   : > { %v1973_v2 = vpop.f32.mrf.mxu3  ;;  %v1490_v50 = vpop.f32.mrf.mxu1 }
 0x192   : > { %v2276_v4 = vsel %vm2243_vm14, %v2226_v12, %v2260_v36  ;;  %v2003_v38 = vadd.f32 %v1973_v2, %v1669_v60  ;;  %v1517_v54 = vadd.f32 %v1490_v50, %v3677_v9 }
 0x193   : > { %2292 = vst [vmem:[%s3757_s7 + $0x30] sm:$0xff] %v2276_v4 }
 0x194   : > { %v2209_v43 = vadd.f32 %v2179_v22, %v2003_v38 }
 0x195   : > { %v1642_v23 = vpop.f32.mrf.mxu2 }
 0x196   : > { %v2227_v16 = vadd.f32 %v3745_v39, %v2209_v43  ;;  %v1670_v24 = vadd.f32 %v1642_v23, %v1516_v44 }
 0x197   : > { %v2182_v59 = vpop.f32.mrf.mxu0 }
 0x198   : > { %vm2244_vm15 = vcmp.gt.f32.partialorder %v2227_v16, 0.0  ;;  %v2261_v30 = vmul.f32 %v3750_v10, %v2227_v16 }
 0x199   : > { %v1976_v41 = vpop.f32.mrf.mxu3  ;;  %v1493_v15 = vpop.f32.mrf.mxu1 }
 0x19a   : > { %v2277_v33 = vsel %vm2244_vm15, %v2227_v16, %v2261_v30  ;;  %v2004_v37 = vadd.f32 %v1976_v41, %v1670_v24  ;;  %v1518_v42 = vadd.f32 %v1493_v15, %v3696_v17 }
 0x19b   : > { %2293 = vst [vmem:[%s3757_s7 + $0x38] sm:$0xff] %v2277_v33 }
 0x19c   : > { %v2210_v56 = vadd.f32 %v2182_v59, %v2004_v37 }
 0x19d   : > { %v1644_v52 = vpop.f32.mrf.mxu2 }
 0x19e   : > { %v2228_v18 = vadd.f32 %v3745_v39, %v2210_v56  ;;  %v1671_v32 = vadd.f32 %v1644_v52, %v1517_v54 }
 0x19f   : > { %v2184_v57 = vpop.f32.mrf.mxu0 }
 0x1a0   : > { %vm2245_vm0 = vcmp.gt.f32.partialorder %v2228_v18, 0.0  ;;  %v2262_v5 = vmul.f32 %v3750_v10, %v2228_v18 }
 0x1a1   : > { %v1978_v47 = vpop.f32.mrf.mxu3  ;;  %v1495_v31 = vpop.f32.mrf.mxu1 }
 0x1a2   : > { %v2278_v27 = vsel %vm2245_vm0, %v2228_v18, %v2262_v5  ;;  %v2005_v48 = vadd.f32 %v1978_v47, %v1671_v32  ;;  %v1519_v45 = vadd.f32 %v1495_v31, %v3710_v8 }
 0x1a3   : > { %2294 = vst [vmem:[%s3757_s7 + $0x40] sm:$0xff] %v2278_v27 }
 0x1a4   : > { %v2211_v61 = vadd.f32 %v2184_v57, %v2005_v48 }
 0x1a5   : > { %v1647_v11 = vpop.f32.mrf.mxu2 }
 0x1a6   : > { %v2229_v9 = vadd.f32 %v3745_v39, %v2211_v61  ;;  %v1672_v46 = vadd.f32 %v1647_v11, %v1518_v42 }
 0x1a7   : > { %v2187_v26 = vpop.f32.mrf.mxu0 }
 0x1a8   : > { %vm2246_vm1 = vcmp.gt.f32.partialorder %v2229_v9, 0.0  ;;  %v2263_v40 = vmul.f32 %v3750_v10, %v2229_v9 }
 0x1a9   : > { %v1981_v25 = vpop.f32.mrf.mxu3  ;;  %v1498_v55 = vpop.f32.mrf.mxu1 }
 0x1aa   : > { %v2279_v51 = vsel %vm2246_vm1, %v2229_v9, %v2263_v40  ;;  %v2006_v7 = vadd.f32 %v1981_v25, %v1672_v46  ;;  %v1520_v6 = vadd.f32 %v1498_v55, %v3722_v58 }
 0x1ab   : > { %2295 = vst [vmem:[%s3757_s7 + $0x48] sm:$0xff] %v2279_v51 }
 0x1ac   : > { %v2212_v53 = vadd.f32 %v2187_v26, %v2006_v7 }
 0x1ad   : > { %v1649_v62 = vpop.f32.mrf.mxu2 }
 0x1ae   : > { %v2230_v17 = vadd.f32 %v3745_v39, %v2212_v53  ;;  %v1673_v0 = vadd.f32 %v1649_v62, %v1519_v45 }
 0x1af   : > { %v2189_v3 = vpop.f32.mrf.mxu0 }
 0x1b0   : > { %vm2247_vm2 = vcmp.gt.f32.partialorder %v2230_v17, 0.0  ;;  %v2264_v1 = vmul.f32 %v3750_v10, %v2230_v17 }
 0x1b1   : > { %v1983_v21 = vpop.f32.mrf.mxu3  ;;  %v1500_v35 = vpop.f32.mrf.mxu1 }
 0x1b2   : > { %v2280_v63 = vsel %vm2247_vm2, %v2230_v17, %v2264_v1  ;;  %v2007_v19 = vadd.f32 %v1983_v21, %v1673_v0  ;;  %v1521_v50 = vadd.f32 %v1500_v35, %v3731_v28 }
 0x1b3   : > { %2296 = vst [vmem:[%s3757_s7 + $0x50] sm:$0xff] %v2280_v63 }
 0x1b4   : > { %v2213_v34 = vadd.f32 %v2189_v3, %v2007_v19 }
 0x1b5   : > { %v1652_v20 = vpop.f32.mrf.mxu2 }
 0x1b6   : > { %v2231_v8 = vadd.f32 %v3745_v39, %v2213_v34  ;;  %v1674_v14 = vadd.f32 %v1652_v20, %v1520_v6 }
 0x1b7   : > { %v2192_v13 = vpop.f32.mrf.mxu0 }
 0x1b8   : > { %vm2248_vm3 = vcmp.gt.f32.partialorder %v2231_v8, 0.0  ;;  %v2265_v12 = vmul.f32 %v3750_v10, %v2231_v8 }
 0x1b9   : > { %v1986_v60 = vpop.f32.mrf.mxu3  ;;  %v1503_v43 = vpop.f32.mrf.mxu1 }
 0x1ba   : > { %v2281_v22 = vsel %vm2248_vm3, %v2231_v8, %v2265_v12  ;;  %v2008_v36 = vadd.f32 %v1986_v60, %v1674_v14  ;;  %v1522_v41 = vadd.f32 %v1503_v43, %v3736_v29 }
 0x1bb   : > { %2297 = vst [vmem:[%s3757_s7 + $0x58] sm:$0xff] %v2281_v22 }
 0x1bc   : > { %v2214_v2 = vadd.f32 %v2192_v13, %v2008_v36 }
 0x1bd   : > { %v1654_v4 = vpop.f32.mrf.mxu2 }
 0x1be   : > { %v2232_v58 = vadd.f32 %v3745_v39, %v2214_v2  ;;  %v1675_v38 = vadd.f32 %v1654_v4, %v1521_v50 }
 0x1bf   : > { %v2194_v44 = vpop.f32.mrf.mxu0 }
 0x1c0   : > { %vm2249_vm4 = vcmp.gt.f32.partialorder %v2232_v58, 0.0  ;;  %v2266_v23 = vmul.f32 %v3750_v10, %v2232_v58 }
 0x1c1   : > { %v1988_v16 = vpop.f32.mrf.mxu3  ;;  %v1505_v56 = vpop.f32.mrf.mxu1 }
 0x1c2   : > { %v2282_v24 = vsel %vm2249_vm4, %v2232_v58, %v2266_v23  ;;  %v2009_v59 = vadd.f32 %v1988_v16, %v1675_v38  ;;  %v1523_v29 = vadd.f32 %v1505_v56, %v3739_v49 }
 0x1c3   : > { %2298 = vst [vmem:[%s3757_s7 + $0x60] sm:$0xff] %v2282_v24 }
 0x1c4   : > { %v2215_v30 = vadd.f32 %v2194_v44, %v2009_v59 }
 0x1c5   : > { %v1657_v28 = vpop.f32.mrf.mxu2 }
 0x1c6   : > { %v2233_v15 = vadd.f32 %v3745_v39, %v2215_v30  ;;  %v1676_v33 = vadd.f32 %v1657_v28, %v1522_v41 }
 0x1c7   : > { %v2197_v54 = vpop.f32.mrf.mxu0 }
 0x1c8   : > { %vm2250_vm5 = vcmp.gt.f32.partialorder %v2233_v15, 0.0  ;;  %v2267_v37 = vmul.f32 %v3750_v10, %v2233_v15 }
 0x1c9   : > { %v1991_v52 = vpop.f32.mrf.mxu3 }
 0x1ca   : > { %v2283_v18 = vsel %vm2250_vm5, %v2233_v15, %v2267_v37  ;;  %v2010_v32 = vadd.f32 %v1991_v52, %v1676_v33 }
 0x1cb   : > { %2299 = vst [vmem:[%s3757_s7 + $0x68] sm:$0xff] %v2283_v18 }
 0x1cc   : > { %v2216_v57 = vadd.f32 %v2197_v54, %v2010_v32 }
 0x1cd   : > { %v1659_v5 = vpop.f32.mrf.mxu2 }
 0x1ce   : > { %v2234_v47 = vadd.f32 %v3745_v39, %v2216_v57  ;;  %v1677_v31 = vadd.f32 %v1659_v5, %v1523_v29 }
 0x1cf   : > { %v2199_v11 = vpop.f32.mrf.mxu0 }
 0x1d0   : > { %vm2251_vm6 = vcmp.gt.f32.partialorder %v2234_v47, 0.0  ;;  %v2268_v27 = vmul.f32 %v3750_v10, %v2234_v47 }
 0x1d1   : > { %v1993_v48 = vpop.f32.mrf.mxu3 }
 0x1d2   : > { %v2284_v61 = vsel %vm2251_vm6, %v2234_v47, %v2268_v27  ;;  %v2011_v42 = vadd.f32 %v1993_v48, %v1677_v31 }
 0x1d3   : > { %2300 = vst [vmem:[%s3757_s7 + $0x70] sm:$0xff] %v2284_v61 }
 0x1d4   : > { %v2217_v49 = vadd.f32 %v2199_v11, %v2011_v42 }
 0x1d6   : > { %v2235_v9 = vadd.f32 %v3745_v39, %v2217_v49 }
 0x1d8   : > { %vm2252_vm7 = vcmp.gt.f32.partialorder %v2235_v9, 0.0  ;;  %v2269_v46 = vmul.f32 %v3750_v10, %v2235_v9 }
 0x1da   : > { %v2285_v26 = vsel %vm2252_vm7, %v2235_v9, %v2269_v46 }
 0x1db   : > { %2301 = vst [vmem:[%s3757_s7 + $0x78] sm:$0xff] %v2285_v26 }
 0x1dc   : > { %2853 = shalt.err (!%p2850_p6)
}
 0x1dd   : > { %s2922_s27 = smov 128   ;;  %s2923_s7 = smov 8  }
 0x1de   : > { %2751 = dma.vmem_to_hbm [thread:$0]  (%p2995_p3), %s2318_s21, 2048, %s2320_s24, %s2303_s28, %s2922_s27, %s2922_s27, %s2923_s7  }
 0x1df PF: > { %p2757_p7 = scmp.ge.s32.totalorder %s2920_s19, 2  ;;  %s2334_s11 = sand.u32 1, %s2892_s12  }
 0x1e0   : > { %s2335_s15 = scalar_lea.sflag [#allocation3], %s2334_s11 }
 0x1e1   : > { %p2754_p9 = pnand %p2757_p7, %p3004_p8 }
 0x1e3   : > { %p2755_p10 = pneg %p2754_p9 }
 0x1e5   : > { %2887 = dma.done.wait (%p2755_p10), %s2335_s15, 2048  }
 0x1e6   : > { %2889 = vsyncadd (%p2755_p10), %s2335_s15, 4294965248  ;;  %s16_s19 = sadd.s32 1, %s2920_s19   ;;  %s3875_s12 = smov %s2896_s13 }
 0x1e7   : > { %p13_p11 = scmp.ge.s32.totalorder %s16_s19, 6   ;;  %s3876_s13 = smov %s2900_s14 }
 0x1e8   : > { %s3877_s14 = smov %s3013_s30  ;;  %s3878_s15 = smov %s2912_s17 }
 0x1e9   : > { %s3879_s16 = smov %s2916_s18  ;;  %s3880_s17 = smov %s3883_s22 }
 0x1ea   : > { %s3881_s18 = smov %s3887_s23  ;;  %15 = sbr.rel (!%p13_p11) target bundleno = 5 (0x5), region = 78 }
 0x1ef   :  { %2341 = vsyncpa [#allocation3], 1 }
 0x1f0   :  { %2343 = vsyncpa [#allocation3 + $0x1], 1 }

</bundles_post_ra>
